<compile_context>
chip_gen: v7x
topology: tpu7x:2x2x1
jax: 0.10.0
libtpu: 0.0.40
codegen_flags: <defaults>
</compile_context>

<pallas_src>
import functools

import jax
import jax.numpy as jnp
from jax.experimental import pallas as pl
from jax.experimental.pallas import tpu as pltpu


def _round_up(n, m):
    return ((n + m - 1) // m) * m


def _supports_bf16_vector_math():
    """bf16 VPU/EUP exists on v6e/v7x; v5e and older must keep f32 activation math."""
    try:
        kind = jax.devices()[0].device_kind.lower()
    except Exception:
        return False
    return ("v6" in kind) or ("v7" in kind)


def _mlp_kernel(x_ref, w1_ref, b1_ref, w2_ref, b2_ref, w3_ref, b3_ref, out_ref, *, bf16_act):
    def sigmoid_to_bf16(z_f32):
        # sigmoid(z) == 0.5*(tanh(0.5*z)+1): transcendental goes to the EUP slot.
        if bf16_act:
            zb = z_f32.astype(jnp.bfloat16)          # bf16 VPU/EUP path (v6e/v7x)
            return 0.5 * (jnp.tanh(0.5 * zb) + 1.0)  # stays bf16 -> feeds MXU directly
        # f32 VPU/EUP path (v5e has no bf16 vector math); single cast for the MXU.
        return (0.5 * (jnp.tanh(0.5 * z_f32) + 1.0)).astype(jnp.bfloat16)

    # Cast the f32 input tile to bf16 in-kernel (saves a wrapper-side HBM pass over x).
    x = x_ref[...].astype(jnp.bfloat16)

    # Layer 1: (tb,784)bf16 @ (784,512)bf16 -> f32 acc; bias add in f32.
    z1 = jnp.dot(x, w1_ref[...], preferred_element_type=jnp.float32) + b1_ref[...]
    s1 = sigmoid_to_bf16(z1)

    # Layer 2: (tb,512)bf16 @ (512,512)bf16 -> f32 acc.
    z2 = jnp.dot(s1, w2_ref[...], preferred_element_type=jnp.float32) + b2_ref[...]
    s2 = sigmoid_to_bf16(z2)

    # Output: (tb,512)bf16 @ (512,128)bf16 -> f32 logits; lane-dense 128-wide bf16 store.
    logits = jnp.dot(s2, w3_ref[...], preferred_element_type=jnp.float32) + b3_ref[...]
    out_ref[...] = logits.astype(out_ref.dtype)


def neural_network_forward(x_nchw, params, *, tb=1024):
    """x_nchw: (B, 1, 28, 28) float32. params: dict of transposed weights/biases."""
    B = x_nchw.shape[0]
    # nn.Flatten: free metadata reshape; keep f32 (bf16 cast happens inside the kernel).
    x = x_nchw.reshape(B, -1)
    in_dim = x.shape[1]

    # bf16 weights (MXU operands), f32 biases (bias add accumulates in f32).
    w1t = params["w1t"].astype(jnp.bfloat16)
    w2t = params["w2t"].astype(jnp.bfloat16)
    w3t = params["w3t"].astype(jnp.bfloat16)
    b1 = params["b1"].astype(jnp.float32).reshape(1, -1)
    b2 = params["b2"].astype(jnp.float32).reshape(1, -1)
    b3 = params["b3"].astype(jnp.float32).reshape(1, -1)

    h1_dim = w1t.shape[1]
    h2_dim = w2t.shape[1]
    out_dim = w3t.shape[1]

    # Pad output features 10 -> 128 for a lane-dense final matmul / unmasked stores.
    OUT_PAD = 128
    w3t_p = jnp.zeros((w3t.shape[0], OUT_PAD), jnp.bfloat16).at[:, :out_dim].set(w3t)
    b3_p = jnp.zeros((1, OUT_PAD), jnp.float32).at[:, :out_dim].set(b3)

    # Effective batch tile:
    #  - clamp to the batch when B is small (avoid >99% zero-padding rows in the demo path),
    #  - for larger batches ensure >= 2 grid steps so both v7x TensorCores get work,
    #  - keep it a multiple of 16 (satisfies the (8,128) sublane rule for f32/bf16 tiles).
    tb_eff = min(tb, _round_up(B, 16))
    if B > 256:
        tb_eff = min(tb_eff, _round_up(pl.cdiv(B, 2), 16))
    tb_eff = max(tb_eff, 16)

    B_pad = _round_up(B, tb_eff)
    if B_pad != B:
        x = jnp.pad(x, ((0, B_pad - B), (0, 0)))  # no-op (skipped) when tb_eff divides B

    grid = (B_pad // tb_eff,)

    flops = 2 * B_pad * (in_dim * h1_dim + h1_dim * h2_dim + h2_dim * OUT_PAD)
    transcendentals = B_pad * (h1_dim + h2_dim)
    bytes_accessed = (
        B_pad * in_dim * 4                                               # f32 input
        + 2 * (in_dim * h1_dim + h1_dim * h2_dim + h2_dim * OUT_PAD)     # bf16 weights
        + 4 * (h1_dim + h2_dim + OUT_PAD)                                # f32 biases
        + B_pad * OUT_PAD * 2                                            # bf16 output
    )

    kernel = functools.partial(_mlp_kernel, bf16_act=_supports_bf16_vector_math())

    out_padded = pl.pallas_call(
        kernel,
        out_shape=jax.ShapeDtypeStruct((B_pad, OUT_PAD), jnp.bfloat16),
        grid=grid,
        in_specs=[
            # x: tiled along batch, double-buffered by the pipeline.
            pl.BlockSpec((tb_eff, in_dim), lambda i: (i, 0)),
            # Weights / biases: constant block index -> fetched once, VMEM-resident.
            pl.BlockSpec((in_dim, h1_dim), lambda i: (0, 0)),
            pl.BlockSpec((1, h1_dim), lambda i: (0, 0)),
            pl.BlockSpec((h1_dim, h2_dim), lambda i: (0, 0)),
            pl.BlockSpec((1, h2_dim), lambda i: (0, 0)),
            pl.BlockSpec((h2_dim, OUT_PAD), lambda i: (0, 0)),
            pl.BlockSpec((1, OUT_PAD), lambda i: (0, 0)),
        ],
        out_specs=pl.BlockSpec((tb_eff, OUT_PAD), lambda i: (i, 0)),
        compiler_params=pltpu.CompilerParams(
            dimension_semantics=("parallel",),     # shard batch tiles across TCs (v7x megacore)
            vmem_limit_bytes=48 * 1024 * 1024,     # room for tb=1024 tiles; safe on 64 MiB v7x
        ),
        cost_estimate=pl.CostEstimate(
            flops=flops,
            transcendentals=transcendentals,
            bytes_accessed=bytes_accessed,
        ),
    )(x, w1t, b1, w2t, b2, w3t_p, b3_p)

    # Slice away batch/feature padding; upcast the tiny (B,10) result for the caller.
    return out_padded[:B, :out_dim].astype(jnp.float32)


def init_params(key):
    """Deterministic init mimicking torch.nn.Linear default (U(-1/sqrt(in), 1/sqrt(in)))."""
    dims = [(28 * 28, 512), (512, 512), (512, 10)]
    params = {}
    for i, (fan_in, fan_out) in enumerate(dims, start=1):
        key, kw, kb = jax.random.split(key, 3)
        bound = 1.0 / jnp.sqrt(fan_in)
        # torch stores W as (out, in); we keep the transposed (in, out) form.
        w = jax.random.uniform(kw, (fan_out, fan_in), jnp.float32, -bound, bound)
        b = jax.random.uniform(kb, (fan_out,), jnp.float32, -bound, bound)
        params[f"w{i}t"] = w.T
        params[f"b{i}"] = b
    return params


def reference_forward(x_nchw, params):
    """Pure-JAX reference mirroring the kernel's bf16-operand / f32-accumulate precision."""
    bf = lambda a: a.astype(jnp.bfloat16).astype(jnp.float32)
    x = x_nchw.reshape(x_nchw.shape[0], -1)
    w1, w2, w3 = bf(params["w1t"]), bf(params["w2t"]), bf(params["w3t"])
    h1 = jax.nn.sigmoid(bf(x) @ w1 + params["b1"])
    h2 = jax.nn.sigmoid(bf(h1) @ w2 + params["b2"])
    return bf(h2) @ w3 + params["b3"]


if __name__ == "__main__":
    key = jax.random.PRNGKey(0)
    key, kx = jax.random.split(key)
    # Small MNIST-shaped batch (NCHW, matching the PyTorch module's expected input).
    x = jax.random.normal(kx, (2, 1, 28, 28), jnp.float32)
    params = init_params(key)

    logits = neural_network_forward(x, params)
    jax.block_until_ready(logits)

    ref = reference_forward(x, params)
    assert logits.shape == (2, 10)
    # bf16 MXU operands, bf16 writeback and (on v6e/v7x) bf16 activation math => loose tolerance.
    assert jnp.allclose(logits, ref, atol=2e-2, rtol=2e-2), "mismatch vs reference"
    print("KERNEL_OK")
</pallas_src>

<mosaic_0001>
module attributes {stable_mosaic.version = 11 : i64} {
  func.func @_mlp_kernel(%arg0: i32, %arg1: memref<16x784xf32, #tpu.memory_space<vmem>>, %arg2: memref<784x512xbf16, #tpu.memory_space<vmem>>, %arg3: memref<1x512xf32, #tpu.memory_space<vmem>>, %arg4: memref<512x512xbf16, #tpu.memory_space<vmem>>, %arg5: memref<1x512xf32, #tpu.memory_space<vmem>>, %arg6: memref<512x128xbf16, #tpu.memory_space<vmem>>, %arg7: memref<1x128xf32, #tpu.memory_space<vmem>>, %arg8: memref<16x128xbf16, #tpu.memory_space<vmem>>) attributes {dimension_semantics = [#tpu.dimension_semantics<parallel>], iteration_bounds = array<i64: 1>, scalar_prefetch = 0 : i64, scratch_operands = 0 : i64, tpu.core_type = #tpu.core_type<tc>, window_params = [{transform_indices = @transform_0, window_bounds = array<i64: 16, 784>}, {pipeline_mode = #tpu.pipeline_mode<synchronous>, transform_indices = @transform_1, window_bounds = array<i64: 784, 512>}, {pipeline_mode = #tpu.pipeline_mode<synchronous>, transform_indices = @transform_2, window_bounds = array<i64: 1, 512>}, {pipeline_mode = #tpu.pipeline_mode<synchronous>, transform_indices = @transform_3, window_bounds = array<i64: 512, 512>}, {pipeline_mode = #tpu.pipeline_mode<synchronous>, transform_indices = @transform_4, window_bounds = array<i64: 1, 512>}, {pipeline_mode = #tpu.pipeline_mode<synchronous>, transform_indices = @transform_5, window_bounds = array<i64: 512, 128>}, {pipeline_mode = #tpu.pipeline_mode<synchronous>, transform_indices = @transform_6, window_bounds = array<i64: 1, 128>}, {transform_indices = @transform_7, window_bounds = array<i64: 16, 128>}]} {
    %c0 = arith.constant 0 : index
    %c0_0 = arith.constant 0 : index
    %0 = vector.load %arg1[%c0, %c0_0] : memref<16x784xf32, #tpu.memory_space<vmem>>, vector<16x784xf32>
    %1 = arith.truncf %0 : vector<16x784xf32> to vector<16x784xbf16>
    %c0_1 = arith.constant 0 : index
    %c0_2 = arith.constant 0 : index
    %2 = vector.load %arg2[%c0_1, %c0_2] : memref<784x512xbf16, #tpu.memory_space<vmem>>, vector<784x512xbf16>
    %cst = arith.constant dense<0.000000e+00> : vector<16x512xf32>
    %3 = tpu.matmul %1, %2, %cst {dimension_numbers = #tpu.dot_dimension_numbers<[1], [0], [0], [1], [0, 0, 1, 1], [], []>} : vector<16x784xbf16>, vector<784x512xbf16>, vector<16x512xf32> -> vector<16x512xf32>
    %c0_3 = arith.constant 0 : index
    %c0_4 = arith.constant 0 : index
    %4 = vector.load %arg3[%c0_3, %c0_4] : memref<1x512xf32, #tpu.memory_space<vmem>>, vector<1x512xf32>
    %5 = vector.broadcast %4 : vector<1x512xf32> to vector<16x512xf32>
    %6 = arith.addf %3, %5 : vector<16x512xf32>
    %cst_5 = arith.constant 5.000000e-01 : f32
    %7 = vector.broadcast %cst_5 : f32 to vector<16x512xf32>
    %8 = arith.mulf %7, %6 : vector<16x512xf32>
    %9 = math.tanh %8 : vector<16x512xf32>
    %cst_6 = arith.constant 1.000000e+00 : f32
    %10 = vector.broadcast %cst_6 : f32 to vector<16x512xf32>
    %11 = arith.addf %9, %10 : vector<16x512xf32>
    %cst_7 = arith.constant 5.000000e-01 : f32
    %12 = vector.broadcast %cst_7 : f32 to vector<16x512xf32>
    %13 = arith.mulf %12, %11 : vector<16x512xf32>
    %14 = arith.truncf %13 : vector<16x512xf32> to vector<16x512xbf16>
    %c0_8 = arith.constant 0 : index
    %c0_9 = arith.constant 0 : index
    %15 = vector.load %arg4[%c0_8, %c0_9] : memref<512x512xbf16, #tpu.memory_space<vmem>>, vector<512x512xbf16>
    %cst_10 = arith.constant dense<0.000000e+00> : vector<16x512xf32>
    %16 = tpu.matmul %14, %15, %cst_10 {dimension_numbers = #tpu.dot_dimension_numbers<[1], [0], [0], [1], [0, 0, 1, 1], [], []>} : vector<16x512xbf16>, vector<512x512xbf16>, vector<16x512xf32> -> vector<16x512xf32>
    %c0_11 = arith.constant 0 : index
    %c0_12 = arith.constant 0 : index
    %17 = vector.load %arg5[%c0_11, %c0_12] : memref<1x512xf32, #tpu.memory_space<vmem>>, vector<1x512xf32>
    %18 = vector.broadcast %17 : vector<1x512xf32> to vector<16x512xf32>
    %19 = arith.addf %16, %18 : vector<16x512xf32>
    %cst_13 = arith.constant 5.000000e-01 : f32
    %20 = vector.broadcast %cst_13 : f32 to vector<16x512xf32>
    %21 = arith.mulf %20, %19 : vector<16x512xf32>
    %22 = math.tanh %21 : vector<16x512xf32>
    %cst_14 = arith.constant 1.000000e+00 : f32
    %23 = vector.broadcast %cst_14 : f32 to vector<16x512xf32>
    %24 = arith.addf %22, %23 : vector<16x512xf32>
    %cst_15 = arith.constant 5.000000e-01 : f32
    %25 = vector.broadcast %cst_15 : f32 to vector<16x512xf32>
    %26 = arith.mulf %25, %24 : vector<16x512xf32>
    %27 = arith.truncf %26 : vector<16x512xf32> to vector<16x512xbf16>
    %c0_16 = arith.constant 0 : index
    %c0_17 = arith.constant 0 : index
    %28 = vector.load %arg6[%c0_16, %c0_17] : memref<512x128xbf16, #tpu.memory_space<vmem>>, vector<512x128xbf16>
    %cst_18 = arith.constant dense<0.000000e+00> : vector<16x128xf32>
    %29 = tpu.matmul %27, %28, %cst_18 {dimension_numbers = #tpu.dot_dimension_numbers<[1], [0], [0], [1], [0, 0, 1, 1], [], []>} : vector<16x512xbf16>, vector<512x128xbf16>, vector<16x128xf32> -> vector<16x128xf32>
    %c0_19 = arith.constant 0 : index
    %c0_20 = arith.constant 0 : index
    %30 = vector.load %arg7[%c0_19, %c0_20] : memref<1x128xf32, #tpu.memory_space<vmem>>, vector<1x128xf32>
    %31 = vector.broadcast %30 : vector<1x128xf32> to vector<16x128xf32>
    %32 = arith.addf %29, %31 : vector<16x128xf32>
    %33 = arith.truncf %32 : vector<16x128xf32> to vector<16x128xbf16>
    %c0_21 = arith.constant 0 : index
    %c0_22 = arith.constant 0 : index
    %34 = vector.load %arg8[%c0_21, %c0_22] : memref<16x128xbf16, #tpu.memory_space<vmem>>, vector<16x128xbf16>
    tpu.vector_store %arg8[%c0_21, %c0_22], %33 {strides = array<i32>} : memref<16x128xbf16, #tpu.memory_space<vmem>>, vector<16x128xbf16>,
    return
  }
  func.func @transform_0(%arg0: i32) -> (i32, i32) {
    %c0_i32 = arith.constant 0 : i32
    %c0_i32_0 = arith.constant 0 : i32
    return %arg0, %c0_i32 : i32, i32
  }
  func.func @transform_1(%arg0: i32) -> (i32, i32) {
    %c0_i32 = arith.constant 0 : i32
    %c0_i32_0 = arith.constant 0 : i32
    %c0_i32_1 = arith.constant 0 : i32
    return %c0_i32, %c0_i32_0 : i32, i32
  }
  func.func @transform_2(%arg0: i32) -> (i32, i32) {
    %c0_i32 = arith.constant 0 : i32
    %c0_i32_0 = arith.constant 0 : i32
    %c0_i32_1 = arith.constant 0 : i32
    return %c0_i32, %c0_i32_0 : i32, i32
  }
  func.func @transform_3(%arg0: i32) -> (i32, i32) {
    %c0_i32 = arith.constant 0 : i32
    %c0_i32_0 = arith.constant 0 : i32
    %c0_i32_1 = arith.constant 0 : i32
    return %c0_i32, %c0_i32_0 : i32, i32
  }
  func.func @transform_4(%arg0: i32) -> (i32, i32) {
    %c0_i32 = arith.constant 0 : i32
    %c0_i32_0 = arith.constant 0 : i32
    %c0_i32_1 = arith.constant 0 : i32
    return %c0_i32, %c0_i32_0 : i32, i32
  }
  func.func @transform_5(%arg0: i32) -> (i32, i32) {
    %c0_i32 = arith.constant 0 : i32
    %c0_i32_0 = arith.constant 0 : i32
    %c0_i32_1 = arith.constant 0 : i32
    return %c0_i32, %c0_i32_0 : i32, i32
  }
  func.func @transform_6(%arg0: i32) -> (i32, i32) {
    %c0_i32 = arith.constant 0 : i32
    %c0_i32_0 = arith.constant 0 : i32
    %c0_i32_1 = arith.constant 0 : i32
    return %c0_i32, %c0_i32_0 : i32, i32
  }
  func.func @transform_7(%arg0: i32) -> (i32, i32) {
    %c0_i32 = arith.constant 0 : i32
    %c0_i32_0 = arith.constant 0 : i32
    return %arg0, %c0_i32 : i32, i32
  }
}

</mosaic_0001>

<bundles_post_ra>
// kernel: tpu_custom_call.1
= control target key start
LH: loop header
LB: loop body
LE: loop exit
PB: predicated region body
PF: predicated region fallthrough
CT: control target
= control target key end

     0   :  { %12 = vsyncpa [#allocation3], 0  ;;  %s4366_s0 = inlined_call_operand.hbm [shape: f32[16,784], index: 0, kind: input, shape index: {}]   ;;  %s4367_s1 = inlined_call_operand.hbm [shape: bf16[784,512], index: 1, kind: input, shape index: {}]   ;;  %s4368_s2 = inlined_call_operand.vmem [shape: f32[1,512], index: 2, kind: input, shape index: {}]   ;;  %s4369_s3 = inlined_call_operand.hbm [shape: bf16[512,512], index: 3, kind: input, shape index: {}]   ;;  %s4370_s4 = inlined_call_operand.vmem [shape: f32[1,512], index: 4, kind: input, shape index: {}]   ;;  %s4371_s5 = inlined_call_operand.hbm [shape: bf16[512,128], index: 5, kind: input, shape index: {}]   ;;  %s4372_s6 = inlined_call_operand.vmem [shape: f32[1,128], index: 6, kind: input, shape index: {}]   ;;  %s4373_s7 = inlined_call_operand.hbm [shape: bf16[16,128], index: 7, kind: output, shape index: {}]  }
   0x1   :  { %13 = vsyncpa [#allocation6], 0 }
   0x2   :  { %14 = vsyncpa [#allocation9], 0 }
   0x3   :  { %15 = vsyncpa [#allocation4], 0  ;;  %s4198_s24 = smov [#allocation5]   ;;  %s4080_s28 = scalar_lea.hbm %s4367_s1, 25088 }
   0x4   :  { %s33_s25 = sshll.u32 %s4198_s24, 4  ;;  %p4081_p0 = scmp.ne.s32.totalorder %s4367_s1, %s4080_s28  ;;  %s34_s25 = int_to_ptr.vmem [resolvable:$true] %s33_s25 }
   0x5   :  { %p4084_p1 = scmp.lt.u32.totalorder %s4080_s28, %s4367_s1 }
   0x7   :  { %p4086_p2 = pnand %p4084_p1, %p4081_p0 }
   0x9   :  { %4089 = shalt.err (!%p4086_p2)
}
   0xa   :  { %s4090_s10 = scalar_lea.vmem %s34_s25, 25088  ;;  %p4095_p4 = scmp.lt.s32.totalorder %s34_s25, %s34_s25 }
   0xb   :  { %p4091_p3 = scmp.ne.s32.totalorder %s34_s25, %s4090_s10  ;;  %p4096_p5 = scmp.lt.s32.totalorder %s4090_s10, %s4090_s10 }
   0xd   :  { %p4097_p6 = por %p4096_p5, %p4095_p4 }
   0xf   :  { %p4098_p7 = pnand %p4097_p6, %p4091_p3 }
  0x11   :  { %4101 = shalt.err (!%p4098_p7)
}
  0x12   :  { %s4199_s11 = smov 256   ;;  %s4200_s12 = smov 16  }
  0x13   :  { %39 = dma.hbm_to_vmem [thread:$0]  %s4367_s1, 25088, %s34_s25, [#allocation6], %s4199_s11, %s4199_s11, %s4200_s12  }
  0x14   :  { %s4201_s15 = smov [#allocation2]   ;;  %s4102_s19 = scalar_lea.hbm %s4366_s0, 1792 }
  0x15   :  { %s21_s16 = sshll.u32 %s4201_s15, 4  ;;  %p4103_p8 = scmp.ne.s32.totalorder %s4366_s0, %s4102_s19  ;;  %s22_s16 = int_to_ptr.vmem [resolvable:$true] %s21_s16 }
  0x16   :  { %p4106_p9 = scmp.lt.u32.totalorder %s4102_s19, %s4366_s0 }
  0x18   :  { %p4108_p10 = pnand %p4106_p9, %p4103_p8 }
  0x1a   :  { %4111 = shalt.err (!%p4108_p10)
}
  0x1b   :  { %s4112_s24 = scalar_lea.vmem %s22_s16, 1792  ;;  %p4117_p12 = scmp.lt.s32.totalorder %s22_s16, %s22_s16 }
  0x1c   :  { %p4113_p11 = scmp.ne.s32.totalorder %s22_s16, %s4112_s24  ;;  %p4118_p13 = scmp.lt.s32.totalorder %s4112_s24, %s4112_s24 }
  0x1e   :  { %p4119_p0 = por %p4118_p13, %p4117_p12 }
  0x20   :  { %p4120_p1 = pnand %p4119_p0, %p4113_p11 }
  0x22   :  { %4123 = shalt.err (!%p4120_p1)
}
  0x23   :  { %s4202_s1 = smov 896   ;;  %s4203_s25 = smov 56  }
  0x24   :  { %27 = dma.hbm_to_vmem [thread:$0]  %s4366_s0, 1792, %s22_s16, [#allocation3], %s4202_s1, %s4202_s1, %s4203_s25  }
  0x25   :  { %s4204_s28 = smov [#allocation7]   ;;  %s4205_s30 = smov [#allocation8]  }
  0x26   :  { %s47_s29 = sshll.u32 %s4204_s28, 4  ;;  %s61_s8 = sshll.u32 %s4205_s30, 4  ;;  %s48_s29 = int_to_ptr.vmem [resolvable:$true] %s47_s29  ;;  %s4277_s8 = int_to_ptr.vmem [resolvable:$true] %s61_s8 }
  0x27   :  { %s4124_s13 = scalar_lea.hbm %s4369_s3, 16384 }
  0x28   :  { %p4125_p2 = scmp.ne.s32.totalorder %s4369_s3, %s4124_s13  ;;  %p4128_p3 = scmp.lt.u32.totalorder %s4124_s13, %s4369_s3 }
  0x2a   :  { %p4130_p4 = pnand %p4128_p3, %p4125_p2 }
  0x2c   :  { %4133 = shalt.err (!%p4130_p4)
}
  0x2d   :  { %s4134_s0 = scalar_lea.vmem %s48_s29, 16384  ;;  %p4139_p6 = scmp.lt.s32.totalorder %s48_s29, %s48_s29 }
  0x2e   :  { %p4135_p5 = scmp.ne.s32.totalorder %s48_s29, %s4134_s0  ;;  %p4140_p7 = scmp.lt.s32.totalorder %s4134_s0, %s4134_s0 }
  0x30   :  { %p4141_p8 = por %p4140_p7, %p4139_p6 }
  0x32   :  { %p4142_p9 = pnand %p4141_p8, %p4135_p5 }
  0x34   :  { %4145 = shalt.err (!%p4142_p9)
}
  0x35   :  { %53 = dma.hbm_to_vmem [thread:$0]  %s4369_s3, 16384, %s48_s29, [#allocation6], %s4199_s11, %s4199_s11, %s4200_s12  }
  0x36   :  { %s4146_s22 = scalar_lea.hbm %s4371_s5, 4096 }
  0x37   :  { %p4147_p10 = scmp.ne.s32.totalorder %s4371_s5, %s4146_s22  ;;  %p4150_p11 = scmp.lt.u32.totalorder %s4146_s22, %s4371_s5 }
  0x39   :  { %p4152_p12 = pnand %p4150_p11, %p4147_p10 }
  0x3b   :  { %4155 = shalt.err (!%p4152_p12)
}
  0x3c   :  { %s4156_s26 = scalar_lea.vmem %s4277_s8, 4096  ;;  %p4161_p0 = scmp.lt.s32.totalorder %s4277_s8, %s4277_s8 }
  0x3d   :  { %p4157_p13 = scmp.ne.s32.totalorder %s4277_s8, %s4156_s26  ;;  %p4162_p1 = scmp.lt.s32.totalorder %s4156_s26, %s4156_s26 }
  0x3f   :  { %p4163_p2 = por %p4162_p1, %p4161_p0 }
  0x41   :  { %p4164_p3 = pnand %p4163_p2, %p4157_p13 }
  0x43   :  { %4167 = shalt.err (!%p4164_p3)
}
  0x44   :  { %s4206_s3 = smov 64   ;;  %s4207_s11 = smov 4  }
  0x45   :  { %67 = dma.hbm_to_vmem [thread:$0]  %s4371_s5, 4096, %s4277_s8, [#allocation9], %s4206_s3, %s4206_s3, %s4207_s11  }
  0x46   :  { %4190 = dma.done.wait [#allocation3], 1792  }
  0x47   :  { %4191 = vsyncadd [#allocation3], 4294965504 }
  0x48   :  { %4192 = dma.done.wait [#allocation6], 41472  }
  0x49   :  { %4193 = vsyncadd [#allocation6], 4294925824 }
  0x4a   :  { %4194 = dma.done.wait [#allocation9], 4096  }
  0x4b   :  { %4195 = vsyncadd [#allocation9], 4294963200  ;;  %v3530_v0 = vld [vmem:[#allocation5 + $0x4] ss:$16 sps:$4 sm:$0xff]   ;;  %v3532_v1 = vld [vmem:[#allocation5 + $0xc] ss:$16 sps:$4 sm:$0xff]  }
  0x4c   :  { %1306 = vmatprep.subr.bf16.mxu0 %v3530_v0  ;;  %v3534_v2 = vld [vmem:[#allocation5] ss:$16 sps:$4 sm:$0xff]   ;;  %v3535_v3 = vld [vmem:[#allocation5 + $0x8] ss:$16 sps:$4 sm:$0xff]   ;;  %1478 = vmatprep.subr.bf16.mxu1 %v3532_v1  ;;  %v3536_v4 = vld [vmem:[#allocation5 + $0x24] ss:$16 sps:$4 sm:$0xff]  }
  0x4d   :  { %1307 = vmatpush1.bf16.msra.mxu0 %v3534_v2  ;;  %1479 = vmatpush1.bf16.msra.mxu1 %v3535_v3  ;;  %v3538_v5 = vld [vmem:[#allocation5 + $0x2c] ss:$16 sps:$4 sm:$0xff]   ;;  %v3540_v6 = vld [vmem:[#allocation5 + $0x20] ss:$16 sps:$4 sm:$0xff]   ;;  %v3541_v7 = vld [vmem:[#allocation5 + $0x28] ss:$16 sps:$4 sm:$0xff]  }
  0x4e   :  { %1308 = vmatprep.subr.bf16.mxu0 %v3536_v4  ;;  %1480 = vmatprep.subr.bf16.mxu1 %v3538_v5  ;;  %v3542_v8 = vld [vmem:[#allocation5 + $0x44] ss:$16 sps:$4 sm:$0xff]   ;;  %v3544_v9 = vld [vmem:[#allocation5 + $0x4c] ss:$16 sps:$4 sm:$0xff]   ;;  %v3546_v10 = vld [vmem:[#allocation5 + $0x40] ss:$16 sps:$4 sm:$0xff]  }
  0x4f   :  { %v3547_v11 = vld [vmem:[#allocation5 + $0x48] ss:$16 sps:$4 sm:$0xff]   ;;  %v3548_v12 = vld [vmem:[#allocation5 + $0x64] ss:$16 sps:$4 sm:$0xff]   ;;  %v3550_v13 = vld [vmem:[#allocation5 + $0x6c] ss:$16 sps:$4 sm:$0xff]  }
  0x50   :  { %v3552_v14 = vld [vmem:[#allocation5 + $0x60] ss:$16 sps:$4 sm:$0xff]   ;;  %v3553_v15 = vld [vmem:[#allocation5 + $0x68] ss:$16 sps:$4 sm:$0xff]   ;;  %v3554_v16 = vld [vmem:[#allocation5 + $0x84] ss:$16 sps:$4 sm:$0xff]  }
  0x51   :  { %1309 = vmatpush1.bf16.msra.mxu0 %v3540_v6  ;;  %1481 = vmatpush1.bf16.msra.mxu1 %v3541_v7  ;;  %v3556_v17 = vld [vmem:[#allocation5 + $0x8c] ss:$16 sps:$4 sm:$0xff]   ;;  %v3558_v18 = vld [vmem:[#allocation5 + $0x80] ss:$16 sps:$4 sm:$0xff]   ;;  %v3559_v19 = vld [vmem:[#allocation5 + $0x88] ss:$16 sps:$4 sm:$0xff]  }
  0x52   :  { %1310 = vmatprep.subr.bf16.mxu0 %v3542_v8  ;;  %1482 = vmatprep.subr.bf16.mxu1 %v3544_v9  ;;  %v3560_v20 = vld [vmem:[#allocation5 + $0xa4] ss:$16 sps:$4 sm:$0xff]   ;;  %v3562_v21 = vld [vmem:[#allocation5 + $0xac] ss:$16 sps:$4 sm:$0xff]   ;;  %v3564_v22 = vld [vmem:[#allocation5 + $0xa0] ss:$16 sps:$4 sm:$0xff]  }
  0x53   :  { %v3565_v23 = vld [vmem:[#allocation5 + $0xa8] ss:$16 sps:$4 sm:$0xff]   ;;  %v3566_v24 = vld [vmem:[#allocation5 + $0xc4] ss:$16 sps:$4 sm:$0xff]   ;;  %v3568_v25 = vld [vmem:[#allocation5 + $0xcc] ss:$16 sps:$4 sm:$0xff]  }
  0x54   :  { %v3570_v26 = vld [vmem:[#allocation5 + $0xc0] ss:$16 sps:$4 sm:$0xff]   ;;  %v3571_v27 = vld [vmem:[#allocation5 + $0xc8] ss:$16 sps:$4 sm:$0xff]   ;;  %v3572_v28 = vld [vmem:[#allocation5 + $0xe4] ss:$16 sps:$4 sm:$0xff]  }
  0x55   :  { %1311 = vmatpush1.bf16.msra.mxu0 %v3546_v10  ;;  %1483 = vmatpush1.bf16.msra.mxu1 %v3547_v11  ;;  %v3574_v29 = vld [vmem:[#allocation5 + $0xec] ss:$16 sps:$4 sm:$0xff]   ;;  %v3576_v30 = vld [vmem:[#allocation5 + $0xe0] ss:$16 sps:$4 sm:$0xff]   ;;  %v3577_v31 = vld [vmem:[#allocation5 + $0xe8] ss:$16 sps:$4 sm:$0xff]  }
  0x56   :  { %1312 = vmatprep.subr.bf16.mxu0 %v3548_v12  ;;  %1484 = vmatprep.subr.bf16.mxu1 %v3550_v13  ;;  %v3578_v32 = vld [vmem:[#allocation5 + $0x104] ss:$16 sps:$4 sm:$0xff]   ;;  %v3580_v33 = vld [vmem:[#allocation5 + $0x10c] ss:$16 sps:$4 sm:$0xff]   ;;  %v3582_v34 = vld [vmem:[#allocation5 + $0x100] ss:$16 sps:$4 sm:$0xff]  }
  0x57   :  { %v3583_v35 = vld [vmem:[#allocation5 + $0x108] ss:$16 sps:$4 sm:$0xff]   ;;  %v3584_v36 = vld [vmem:[#allocation5 + $0x124] ss:$16 sps:$4 sm:$0xff]   ;;  %v3586_v37 = vld [vmem:[#allocation5 + $0x12c] ss:$16 sps:$4 sm:$0xff]  }
  0x58   :  { %v3588_v38 = vld [vmem:[#allocation5 + $0x120] ss:$16 sps:$4 sm:$0xff]   ;;  %v3589_v39 = vld [vmem:[#allocation5 + $0x128] ss:$16 sps:$4 sm:$0xff]   ;;  %v3590_v40 = vld [vmem:[#allocation5 + $0x144] ss:$16 sps:$4 sm:$0xff]  }
  0x59   :  { %1313 = vmatpush1.bf16.msra.mxu0 %v3552_v14  ;;  %1485 = vmatpush1.bf16.msra.mxu1 %v3553_v15  ;;  %v3592_v41 = vld [vmem:[#allocation5 + $0x14c] ss:$16 sps:$4 sm:$0xff]   ;;  %v3594_v42 = vld [vmem:[#allocation5 + $0x140] ss:$16 sps:$4 sm:$0xff]   ;;  %v3595_v43 = vld [vmem:[#allocation5 + $0x148] ss:$16 sps:$4 sm:$0xff]  }
  0x5a   :  { %1314 = vmatprep.subr.bf16.mxu0 %v3554_v16  ;;  %1486 = vmatprep.subr.bf16.mxu1 %v3556_v17  ;;  %v3596_v44 = vld [vmem:[#allocation5 + $0x164] ss:$16 sps:$4 sm:$0xff]   ;;  %v3598_v45 = vld [vmem:[#allocation5 + $0x16c] ss:$16 sps:$4 sm:$0xff]   ;;  %v3600_v48 = vld [vmem:[#allocation5 + $0x160] ss:$16 sps:$4 sm:$0xff]  }
  0x5b   :  { %v84_v46 = vld [vmem:[#allocation2 + $0x8] sm:$0xff]  ;;  %v91_v47 = vld [vmem:[#allocation2 + $0x40] sm:$0xff]  ;;  %v90_v5 = vld [vmem:[#allocation2 + $0x38] sm:$0xff]  ;;  %vm1302_vm0 = vcmask 130048   ;;  %s4209_s8 = smov [#allocation10]  }
  0x5c   :  { %v3601_v49 = vld [vmem:[#allocation5 + $0x168] ss:$16 sps:$4 sm:$0xff]   ;;  %v98_v50 = vpack.c.bf16 %v91_v47, %v84_v46  ;;  %v3602_v51 = vld [vmem:[#allocation5 + $0x184] ss:$16 sps:$4 sm:$0xff]   ;;  %v3604_v52 = vld [vmem:[#allocation5 + $0x18c] ss:$16 sps:$4 sm:$0xff]  }
  0x5d   :  { %1315 = vmatpush1.bf16.msra.mxu0 %v3558_v18  ;;  %1487 = vmatpush1.bf16.msra.mxu1 %v3559_v19  ;;  %v3606_v53 = vld [vmem:[#allocation5 + $0x180] ss:$16 sps:$4 sm:$0xff]   ;;  %v3607_v54 = vld [vmem:[#allocation5 + $0x188] ss:$16 sps:$4 sm:$0xff]   ;;  %v3608_v55 = vld [vmem:[#allocation5 + $0x1a4] ss:$16 sps:$4 sm:$0xff]  }
  0x5e   :  { %1316 = vmatprep.subr.bf16.mxu0 %v3560_v20  ;;  %1488 = vmatprep.subr.bf16.mxu1 %v3562_v21  ;;  %v3610_v56 = vld [vmem:[#allocation5 + $0x1ac] ss:$16 sps:$4 sm:$0xff]   ;;  %v3612_v57 = vld [vmem:[#allocation5 + $0x1a0] ss:$16 sps:$4 sm:$0xff]   ;;  %v3613_v58 = vld [vmem:[#allocation5 + $0x1a8] ss:$16 sps:$4 sm:$0xff]  }
  0x5f   :  { %1338 = vmatprep.mubr.bf16.mxu0 %v98_v50  ;;  %1510 = vmatprep.mubr.bf16.mxu1 %v98_v50  ;;  %v3614_v59 = vld [vmem:[#allocation5 + $0x1c4] ss:$16 sps:$4 sm:$0xff]   ;;  %v3616_v60 = vld [vmem:[#allocation5 + $0x1cc] ss:$16 sps:$4 sm:$0xff]   ;;  %v3618_v61 = vld [vmem:[#allocation5 + $0x1c0] ss:$16 sps:$4 sm:$0xff]  }
  0x60   :  { %v3619_v62 = vld [vmem:[#allocation5 + $0x1c8] ss:$16 sps:$4 sm:$0xff]   ;;  %v3620_v63 = vld [vmem:[#allocation5 + $0x1e4] ss:$16 sps:$4 sm:$0xff]   ;;  %v3622_v0 = vld [vmem:[#allocation5 + $0x1ec] ss:$16 sps:$4 sm:$0xff]  }
  0x61   :  { %1317 = vmatpush1.bf16.msra.mxu0 %v3564_v22  ;;  %1489 = vmatpush1.bf16.msra.mxu1 %v3565_v23  ;;  %v3624_v1 = vld [vmem:[#allocation5 + $0x1e0] ss:$16 sps:$4 sm:$0xff]   ;;  %v3625_v2 = vld [vmem:[#allocation5 + $0x1e8] ss:$16 sps:$4 sm:$0xff]   ;;  %v3628_v3 = vld [vmem:[#allocation5 + $0x204] ss:$16 sps:$4 sm:$0xff]  }
  0x62   :  { %1318 = vmatprep.subr.bf16.mxu0 %v3566_v24  ;;  %1490 = vmatprep.subr.bf16.mxu1 %v3568_v25  ;;  %v83_v4 = vld [vmem:[#allocation2] sm:$0xff]  ;;  %v3631_v6 = vld [vmem:[#allocation5 + $0x20c] ss:$16 sps:$4 sm:$0xff]   ;;  %v3629_v8 = vld [vmem:[#allocation5 + $0x208] ss:$16 sps:$4 sm:$0xff]   ;;  %s3044_s9 = sshll.u32 %s4209_s8, 4  ;;  %s3045_s9 = int_to_ptr.vmem [resolvable:$true] %s3044_s9 }
  0x63   :  { %v3626_v7 = vld [vmem:[#allocation5 + $0x200] ss:$16 sps:$4 sm:$0xff]   ;;  %v97_v9 = vpack.c.bf16 %v90_v5, %v83_v4  ;;  %v3634_v10 = vld [vmem:[#allocation5 + $0x224] ss:$16 sps:$4 sm:$0xff]   ;;  %v3637_v11 = vld [vmem:[#allocation5 + $0x22c] ss:$16 sps:$4 sm:$0xff]   ;;  %p4173_p5 = scmp.lt.s32.totalorder %s3045_s9, %s3045_s9 }
  0x64   :  { %v3632_v12 = vld [vmem:[#allocation5 + $0x220] ss:$16 sps:$4 sm:$0xff]   ;;  %v3635_v13 = vld [vmem:[#allocation5 + $0x228] ss:$16 sps:$4 sm:$0xff]   ;;  %v3640_v14 = vld [vmem:[#allocation5 + $0x244] ss:$16 sps:$4 sm:$0xff]  }
  0x65   :  { %1319 = vmatpush1.bf16.msra.mxu0 %v3570_v26  ;;  %1491 = vmatpush1.bf16.msra.mxu1 %v3571_v27  ;;  %v3643_v15 = vld [vmem:[#allocation5 + $0x24c] ss:$16 sps:$4 sm:$0xff]   ;;  %v3638_v16 = vld [vmem:[#allocation5 + $0x240] ss:$16 sps:$4 sm:$0xff]   ;;  %v3641_v17 = vld [vmem:[#allocation5 + $0x248] ss:$16 sps:$4 sm:$0xff]  }
  0x66   :  { %1320 = vmatprep.subr.bf16.mxu0 %v3572_v28  ;;  %1492 = vmatprep.subr.bf16.mxu1 %v3574_v29  ;;  %v3646_v18 = vld [vmem:[#allocation5 + $0x264] ss:$16 sps:$4 sm:$0xff]   ;;  %v3649_v19 = vld [vmem:[#allocation5 + $0x26c] ss:$16 sps:$4 sm:$0xff]   ;;  %v3644_v20 = vld [vmem:[#allocation5 + $0x260] ss:$16 sps:$4 sm:$0xff]  }
  0x67   :  { %v3647_v21 = vld [vmem:[#allocation5 + $0x268] ss:$16 sps:$4 sm:$0xff]   ;;  %v3652_v22 = vld [vmem:[#allocation5 + $0x284] ss:$16 sps:$4 sm:$0xff]   ;;  %v3655_v23 = vld [vmem:[#allocation5 + $0x28c] ss:$16 sps:$4 sm:$0xff]  }
  0x68   :  { %v3650_v24 = vld [vmem:[#allocation5 + $0x280] ss:$16 sps:$4 sm:$0xff]   ;;  %v3653_v25 = vld [vmem:[#allocation5 + $0x288] ss:$16 sps:$4 sm:$0xff]   ;;  %v3658_v26 = vld [vmem:[#allocation5 + $0x2a4] ss:$16 sps:$4 sm:$0xff]  }
  0x69   :  { %1321 = vmatpush1.bf16.msra.mxu0 %v3576_v30  ;;  %1493 = vmatpush1.bf16.msra.mxu1 %v3577_v31  ;;  %v3661_v27 = vld [vmem:[#allocation5 + $0x2ac] ss:$16 sps:$4 sm:$0xff]   ;;  %v3656_v28 = vld [vmem:[#allocation5 + $0x2a0] ss:$16 sps:$4 sm:$0xff]   ;;  %v3659_v29 = vld [vmem:[#allocation5 + $0x2a8] ss:$16 sps:$4 sm:$0xff]  }
  0x6a   :  { %1322 = vmatprep.subr.bf16.mxu0 %v3578_v32  ;;  %1494 = vmatprep.subr.bf16.mxu1 %v3580_v33  ;;  %v3664_v30 = vld [vmem:[#allocation5 + $0x2c4] ss:$16 sps:$4 sm:$0xff]   ;;  %v3667_v31 = vld [vmem:[#allocation5 + $0x2cc] ss:$16 sps:$4 sm:$0xff]   ;;  %v3680_v47 = vld [vmem:[#allocation5 + $0x320] ss:$16 sps:$4 sm:$0xff]  }
  0x6b   :  { %v86_v32 = vld [vmem:[#allocation2 + $0x18] sm:$0xff]  ;;  %v93_v33 = vld [vmem:[#allocation2 + $0x50] sm:$0xff] }
  0x6c   :  { %v3685_v46 = vld [vmem:[#allocation5 + $0x32c] ss:$16 sps:$4 sm:$0xff]   ;;  %v3713_v4 = vld [vmem:[#allocation5 + $0x3c8] ss:$16 sps:$4 sm:$0xff]   ;;  %v3718_v5 = vld [vmem:[#allocation5 + $0x3e4] ss:$16 sps:$4 sm:$0xff]  }
  0x6d   :  { %1323 = vmatpush1.bf16.msra.mxu0 %v3582_v34  ;;  %1495 = vmatpush1.bf16.msra.mxu1 %v3583_v35  ;;  %v3662_v34 = vld [vmem:[#allocation5 + $0x2c0] ss:$16 sps:$4 sm:$0xff]   ;;  %v3665_v35 = vld [vmem:[#allocation5 + $0x2c8] ss:$16 sps:$4 sm:$0xff]   ;;  %v3691_v50 = vld [vmem:[#allocation5 + $0x34c] ss:$16 sps:$4 sm:$0xff]  }
  0x6e   :  { %1324 = vmatprep.subr.bf16.mxu0 %v3584_v36  ;;  %1496 = vmatprep.subr.bf16.mxu1 %v3586_v37  ;;  %v100_v36 = vpack.c.bf16 %v93_v33, %v86_v32  ;;  %v3670_v37 = vld [vmem:[#allocation5 + $0x2e4] ss:$16 sps:$4 sm:$0xff]   ;;  %v3751_v32 = vld [vmem:[#allocation5 + $0x48c] ss:$16 sps:$4 sm:$0xff]   ;;  %v3746_v33 = vld [vmem:[#allocation5 + $0x480] ss:$16 sps:$4 sm:$0xff]  }
  0x71   :  { %1325 = vmatpush1.bf16.msra.mxu0 %v3588_v38  ;;  %1497 = vmatpush1.bf16.msra.mxu1 %v3589_v39  ;;  %v3673_v38 = vld [vmem:[#allocation5 + $0x2ec] ss:$16 sps:$4 sm:$0xff]   ;;  %v3668_v39 = vld [vmem:[#allocation5 + $0x2e0] ss:$16 sps:$4 sm:$0xff]  }
  0x72   :  { %1326 = vmatprep.subr.bf16.mxu0 %v3590_v40  ;;  %1498 = vmatprep.subr.bf16.mxu1 %v3592_v41  ;;  %v3671_v40 = vld [vmem:[#allocation5 + $0x2e8] ss:$16 sps:$4 sm:$0xff]   ;;  %v3676_v41 = vld [vmem:[#allocation5 + $0x304] ss:$16 sps:$4 sm:$0xff]  }
  0x75   :  { %1327 = vmatpush1.bf16.msra.mxu0 %v3594_v42  ;;  %1499 = vmatpush1.bf16.msra.mxu1 %v3595_v43  ;;  %v3679_v42 = vld [vmem:[#allocation5 + $0x30c] ss:$16 sps:$4 sm:$0xff]   ;;  %v3674_v43 = vld [vmem:[#allocation5 + $0x300] ss:$16 sps:$4 sm:$0xff]  }
  0x76   :  { %1328 = vmatprep.subr.bf16.mxu0 %v3596_v44  ;;  %1500 = vmatprep.subr.bf16.mxu1 %v3598_v45  ;;  %v3677_v44 = vld [vmem:[#allocation5 + $0x308] ss:$16 sps:$4 sm:$0xff]   ;;  %v3682_v45 = vld [vmem:[#allocation5 + $0x324] ss:$16 sps:$4 sm:$0xff]  }
  0x79   :  { %1329 = vmatpush1.bf16.msra.mxu0 %v3600_v48  ;;  %1501 = vmatpush1.bf16.msra.mxu1 %v3601_v49  ;;  %v3683_v48 = vld [vmem:[#allocation5 + $0x328] ss:$16 sps:$4 sm:$0xff]   ;;  %v3688_v49 = vld [vmem:[#allocation5 + $0x344] ss:$16 sps:$4 sm:$0xff]  }
  0x7a   :  { %1330 = vmatprep.subr.bf16.mxu0 %v3602_v51  ;;  %1502 = vmatprep.subr.bf16.mxu1 %v3604_v52  ;;  %v3686_v51 = vld [vmem:[#allocation5 + $0x340] ss:$16 sps:$4 sm:$0xff]   ;;  %v3689_v52 = vld [vmem:[#allocation5 + $0x348] ss:$16 sps:$4 sm:$0xff]  }
  0x7d   :  { %1331 = vmatpush1.bf16.msra.mxu0 %v3606_v53  ;;  %1503 = vmatpush1.bf16.msra.mxu1 %v3607_v54  ;;  %v3694_v53 = vld [vmem:[#allocation5 + $0x364] ss:$16 sps:$4 sm:$0xff]   ;;  %v3697_v54 = vld [vmem:[#allocation5 + $0x36c] ss:$16 sps:$4 sm:$0xff]  }
  0x7e   :  { %1332 = vmatprep.subr.bf16.mxu0 %v3608_v55  ;;  %1504 = vmatprep.subr.bf16.mxu1 %v3610_v56  ;;  %v3692_v55 = vld [vmem:[#allocation5 + $0x360] ss:$16 sps:$4 sm:$0xff]   ;;  %v3695_v56 = vld [vmem:[#allocation5 + $0x368] ss:$16 sps:$4 sm:$0xff]  }
  0x81   :  { %1333 = vmatpush1.bf16.msra.mxu0 %v3612_v57  ;;  %1505 = vmatpush1.bf16.msra.mxu1 %v3613_v58  ;;  %v3700_v57 = vld [vmem:[#allocation5 + $0x384] ss:$16 sps:$4 sm:$0xff]   ;;  %v3703_v58 = vld [vmem:[#allocation5 + $0x38c] ss:$16 sps:$4 sm:$0xff]  }
  0x82   :  { %1334 = vmatprep.subr.bf16.mxu0 %v3614_v59  ;;  %1506 = vmatprep.subr.bf16.mxu1 %v3616_v60  ;;  %v3698_v59 = vld [vmem:[#allocation5 + $0x380] ss:$16 sps:$4 sm:$0xff]   ;;  %v3701_v60 = vld [vmem:[#allocation5 + $0x388] ss:$16 sps:$4 sm:$0xff]  }
  0x85   :  { %1335 = vmatpush1.bf16.msra.mxu0 %v3618_v61  ;;  %1507 = vmatpush1.bf16.msra.mxu1 %v3619_v62  ;;  %v3706_v61 = vld [vmem:[#allocation5 + $0x3a4] ss:$16 sps:$4 sm:$0xff]   ;;  %v3709_v62 = vld [vmem:[#allocation5 + $0x3ac] ss:$16 sps:$4 sm:$0xff]  }
  0x86   :  { %1336 = vmatprep.subr.bf16.mxu0 %v3620_v63  ;;  %1508 = vmatprep.subr.bf16.mxu1 %v3622_v0  ;;  %v3704_v63 = vld [vmem:[#allocation5 + $0x3a0] ss:$16 sps:$4 sm:$0xff]   ;;  %v3707_v0 = vld [vmem:[#allocation5 + $0x3a8] ss:$16 sps:$4 sm:$0xff]  }
  0x89   :  { %1337 = vmatpush1.bf16.msra.mxu0 %v3624_v1  ;;  %1509 = vmatpush1.bf16.msra.mxu1 %v3625_v2  ;;  %v3712_v1 = vld [vmem:[#allocation5 + $0x3c4] ss:$16 sps:$4 sm:$0xff]   ;;  %v3715_v2 = vld [vmem:[#allocation5 + $0x3cc] ss:$16 sps:$4 sm:$0xff]  }
  0x8a   :  { %1349 = vmatprep.subr.bf16.mxu0 %v3628_v3  ;;  %1521 = vmatprep.subr.bf16.mxu1 %v3631_v6  ;;  %v3710_v3 = vld [vmem:[#allocation5 + $0x3c0] ss:$16 sps:$4 sm:$0xff]   ;;  %v3721_v6 = vld [vmem:[#allocation5 + $0x3ec] ss:$16 sps:$4 sm:$0xff]  }
  0x8c   :  { %1339 = vmatmul.mubr.bf16.vlgmr.msra.gmra.mrb[0].mxu0 %v97_v9  ;;  %1511 = vmatmul.mubr.bf16.vlgmr.msra.gmra.mrb[0].mxu1 %v97_v9  ;;  %v3724_v9 = vld [vmem:[#allocation5 + $0x404] ss:$16 sps:$4 sm:$0xff]  }
  0x8d   :  { %1350 = vmatpush1.bf16.msra.mxu0 %v3626_v7  ;;  %1522 = vmatpush1.bf16.msra.mxu1 %v3629_v8  ;;  %v3716_v7 = vld [vmem:[#allocation5 + $0x3e0] ss:$16 sps:$4 sm:$0xff]   ;;  %v3719_v8 = vld [vmem:[#allocation5 + $0x3e8] ss:$16 sps:$4 sm:$0xff]  }
  0x8e   :  { %1351 = vmatprep.subr.bf16.mxu0 %v3634_v10  ;;  %1523 = vmatprep.subr.bf16.mxu1 %v3637_v11  ;;  %v85_v10 = vld [vmem:[#allocation2 + $0x10] sm:$0xff]  ;;  %v92_v11 = vld [vmem:[#allocation2 + $0x48] sm:$0xff] }
  0x8f   :  { %1381 = vmatprep.mubr.bf16.mxu0 %v100_v36  ;;  %1553 = vmatprep.mubr.bf16.mxu1 %v100_v36  ;;  %v3757_v36 = vld [vmem:[#allocation5 + $0x4ac] ss:$16 sps:$4 sm:$0xff]  }
  0x91   :  { %1352 = vmatpush1.bf16.msra.mxu0 %v3632_v12  ;;  %1524 = vmatpush1.bf16.msra.mxu1 %v3635_v13  ;;  %v3727_v12 = vld [vmem:[#allocation5 + $0x40c] ss:$16 sps:$4 sm:$0xff]   ;;  %v3722_v13 = vld [vmem:[#allocation5 + $0x400] ss:$16 sps:$4 sm:$0xff]  }
  0x92   :  { %1353 = vmatprep.subr.bf16.mxu0 %v3640_v14  ;;  %1525 = vmatprep.subr.bf16.mxu1 %v3643_v15  ;;  %v3725_v14 = vld [vmem:[#allocation5 + $0x408] ss:$16 sps:$4 sm:$0xff]   ;;  %v99_v15 = vpack.c.bf16 %v92_v11, %v85_v10  ;;  %v3814_v11 = vld [vmem:[#allocation5 + $0x5e4] ss:$16 sps:$4 sm:$0xff]  }
  0x93   :  { %v3809_v10 = vld [vmem:[#allocation5 + $0x5c8] ss:$16 sps:$4 sm:$0xff]  }
  0x95   :  { %1354 = vmatpush1.bf16.msra.mxu0 %v3638_v16  ;;  %1526 = vmatpush1.bf16.msra.mxu1 %v3641_v17  ;;  %v3730_v16 = vld [vmem:[#allocation5 + $0x424] ss:$16 sps:$4 sm:$0xff]   ;;  %v3733_v17 = vld [vmem:[#allocation5 + $0x42c] ss:$16 sps:$4 sm:$0xff]  }
  0x96   :  { %1355 = vmatprep.subr.bf16.mxu0 %v3646_v18  ;;  %1527 = vmatprep.subr.bf16.mxu1 %v3649_v19  ;;  %v88_v18 = vld [vmem:[#allocation2 + $0x28] sm:$0xff]  ;;  %v3728_v19 = vld [vmem:[#allocation5 + $0x420] ss:$16 sps:$4 sm:$0xff]  }
  0x99   :  { %1356 = vmatpush1.bf16.msra.mxu0 %v3644_v20  ;;  %1528 = vmatpush1.bf16.msra.mxu1 %v3647_v21  ;;  %v3731_v20 = vld [vmem:[#allocation5 + $0x428] ss:$16 sps:$4 sm:$0xff]   ;;  %v95_v21 = vld [vmem:[#allocation2 + $0x60] sm:$0xff] }
  0x9a   :  { %1357 = vmatprep.subr.bf16.mxu0 %v3652_v22  ;;  %1529 = vmatprep.subr.bf16.mxu1 %v3655_v23  ;;  %v3736_v22 = vld [vmem:[#allocation5 + $0x444] ss:$16 sps:$4 sm:$0xff]   ;;  %v102_v23 = vpack.c.bf16 %v95_v21, %v88_v18  ;;  %v3823_v18 = vld [vmem:[#allocation5 + $0x60c] ss:$16 sps:$4 sm:$0xff]  }
  0x9d   :  { %1358 = vmatpush1.bf16.msra.mxu0 %v3650_v24  ;;  %1530 = vmatpush1.bf16.msra.mxu1 %v3653_v25  ;;  %v3739_v24 = vld [vmem:[#allocation5 + $0x44c] ss:$16 sps:$4 sm:$0xff]   ;;  %v3734_v25 = vld [vmem:[#allocation5 + $0x440] ss:$16 sps:$4 sm:$0xff]  }
  0x9e   :  { %1359 = vmatprep.subr.bf16.mxu0 %v3658_v26  ;;  %1531 = vmatprep.subr.bf16.mxu1 %v3661_v27  ;;  %v3737_v26 = vld [vmem:[#allocation5 + $0x448] ss:$16 sps:$4 sm:$0xff]   ;;  %v3742_v27 = vld [vmem:[#allocation5 + $0x464] ss:$16 sps:$4 sm:$0xff]  }
  0xa1   :  { %1360 = vmatpush1.bf16.msra.mxu0 %v3656_v28  ;;  %1532 = vmatpush1.bf16.msra.mxu1 %v3659_v29  ;;  %v3745_v28 = vld [vmem:[#allocation5 + $0x46c] ss:$16 sps:$4 sm:$0xff]   ;;  %v3740_v29 = vld [vmem:[#allocation5 + $0x460] ss:$16 sps:$4 sm:$0xff]  }
  0xa2   :  { %1361 = vmatprep.subr.bf16.mxu0 %v3664_v30  ;;  %1533 = vmatprep.subr.bf16.mxu1 %v3667_v31  ;;  %v3743_v30 = vld [vmem:[#allocation5 + $0x468] ss:$16 sps:$4 sm:$0xff]   ;;  %v3748_v31 = vld [vmem:[#allocation5 + $0x484] ss:$16 sps:$4 sm:$0xff]  }
  0xa5   :  { %1362 = vmatpush1.bf16.msra.mxu0 %v3662_v34  ;;  %1534 = vmatpush1.bf16.msra.mxu1 %v3665_v35  ;;  %v3749_v34 = vld [vmem:[#allocation5 + $0x488] ss:$16 sps:$4 sm:$0xff]   ;;  %v3754_v35 = vld [vmem:[#allocation5 + $0x4a4] ss:$16 sps:$4 sm:$0xff]  }
  0xa6   :  { %1363 = vmatprep.subr.bf16.mxu0 %v3670_v37  ;;  %1535 = vmatprep.subr.bf16.mxu1 %v3673_v38  ;;  %v3752_v37 = vld [vmem:[#allocation5 + $0x4a0] ss:$16 sps:$4 sm:$0xff]   ;;  %v3755_v38 = vld [vmem:[#allocation5 + $0x4a8] ss:$16 sps:$4 sm:$0xff]  }
  0xa9   :  { %1364 = vmatpush1.bf16.msra.mxu0 %v3668_v39  ;;  %1536 = vmatpush1.bf16.msra.mxu1 %v3671_v40  ;;  %v3760_v39 = vld [vmem:[#allocation5 + $0x4c4] ss:$16 sps:$4 sm:$0xff]   ;;  %v3763_v40 = vld [vmem:[#allocation5 + $0x4cc] ss:$16 sps:$4 sm:$0xff]  }
  0xaa   :  { %1365 = vmatprep.subr.bf16.mxu0 %v3676_v41  ;;  %1537 = vmatprep.subr.bf16.mxu1 %v3679_v42  ;;  %v3758_v41 = vld [vmem:[#allocation5 + $0x4c0] ss:$16 sps:$4 sm:$0xff]   ;;  %v3761_v42 = vld [vmem:[#allocation5 + $0x4c8] ss:$16 sps:$4 sm:$0xff]  }
  0xad   :  { %1366 = vmatpush1.bf16.msra.mxu0 %v3674_v43  ;;  %1538 = vmatpush1.bf16.msra.mxu1 %v3677_v44  ;;  %v3766_v43 = vld [vmem:[#allocation5 + $0x4e4] ss:$16 sps:$4 sm:$0xff]   ;;  %v3769_v44 = vld [vmem:[#allocation5 + $0x4ec] ss:$16 sps:$4 sm:$0xff]  }
  0xae   :  { %1367 = vmatprep.subr.bf16.mxu0 %v3682_v45  ;;  %1539 = vmatprep.subr.bf16.mxu1 %v3685_v46  ;;  %v3764_v45 = vld [vmem:[#allocation5 + $0x4e0] ss:$16 sps:$4 sm:$0xff]   ;;  %v3767_v46 = vld [vmem:[#allocation5 + $0x4e8] ss:$16 sps:$4 sm:$0xff]  }
  0xb1   :  { %1368 = vmatpush1.bf16.msra.mxu0 %v3680_v47  ;;  %1540 = vmatpush1.bf16.msra.mxu1 %v3683_v48  ;;  %v3772_v47 = vld [vmem:[#allocation5 + $0x504] ss:$16 sps:$4 sm:$0xff]   ;;  %v3775_v48 = vld [vmem:[#allocation5 + $0x50c] ss:$16 sps:$4 sm:$0xff]  }
  0xb2   :  { %1369 = vmatprep.subr.bf16.mxu0 %v3688_v49  ;;  %1541 = vmatprep.subr.bf16.mxu1 %v3691_v50  ;;  %v3770_v49 = vld [vmem:[#allocation5 + $0x500] ss:$16 sps:$4 sm:$0xff]   ;;  %v3773_v50 = vld [vmem:[#allocation5 + $0x508] ss:$16 sps:$4 sm:$0xff]  }
  0xb5   :  { %1370 = vmatpush1.bf16.msra.mxu0 %v3686_v51  ;;  %1542 = vmatpush1.bf16.msra.mxu1 %v3689_v52  ;;  %v3778_v51 = vld [vmem:[#allocation5 + $0x524] ss:$16 sps:$4 sm:$0xff]   ;;  %v3781_v52 = vld [vmem:[#allocation5 + $0x52c] ss:$16 sps:$4 sm:$0xff]  }
  0xb6   :  { %1371 = vmatprep.subr.bf16.mxu0 %v3694_v53  ;;  %1543 = vmatprep.subr.bf16.mxu1 %v3697_v54  ;;  %v3776_v53 = vld [vmem:[#allocation5 + $0x520] ss:$16 sps:$4 sm:$0xff]   ;;  %v3779_v54 = vld [vmem:[#allocation5 + $0x528] ss:$16 sps:$4 sm:$0xff]  }
  0xb9   :  { %1372 = vmatpush1.bf16.msra.mxu0 %v3692_v55  ;;  %1544 = vmatpush1.bf16.msra.mxu1 %v3695_v56  ;;  %v3784_v55 = vld [vmem:[#allocation5 + $0x544] ss:$16 sps:$4 sm:$0xff]   ;;  %v3787_v56 = vld [vmem:[#allocation5 + $0x54c] ss:$16 sps:$4 sm:$0xff]  }
  0xba   :  { %1373 = vmatprep.subr.bf16.mxu0 %v3700_v57  ;;  %1545 = vmatprep.subr.bf16.mxu1 %v3703_v58  ;;  %v3782_v57 = vld [vmem:[#allocation5 + $0x540] ss:$16 sps:$4 sm:$0xff]   ;;  %v3785_v58 = vld [vmem:[#allocation5 + $0x548] ss:$16 sps:$4 sm:$0xff]  }
  0xbd   :  { %1374 = vmatpush1.bf16.msra.mxu0 %v3698_v59  ;;  %1546 = vmatpush1.bf16.msra.mxu1 %v3701_v60  ;;  %v3790_v59 = vld [vmem:[#allocation5 + $0x564] ss:$16 sps:$4 sm:$0xff]   ;;  %v3793_v60 = vld [vmem:[#allocation5 + $0x56c] ss:$16 sps:$4 sm:$0xff]  }
  0xbe   :  { %1375 = vmatprep.subr.bf16.mxu0 %v3706_v61  ;;  %1547 = vmatprep.subr.bf16.mxu1 %v3709_v62  ;;  %v3788_v61 = vld [vmem:[#allocation5 + $0x560] ss:$16 sps:$4 sm:$0xff]   ;;  %v3791_v62 = vld [vmem:[#allocation5 + $0x568] ss:$16 sps:$4 sm:$0xff]  }
  0xc1   :  { %1376 = vmatpush1.bf16.msra.mxu0 %v3704_v63  ;;  %1548 = vmatpush1.bf16.msra.mxu1 %v3707_v0  ;;  %v3796_v63 = vld [vmem:[#allocation5 + $0x584] ss:$16 sps:$4 sm:$0xff]   ;;  %v3799_v0 = vld [vmem:[#allocation5 + $0x58c] ss:$16 sps:$4 sm:$0xff]  }
  0xc2   :  { %1377 = vmatprep.subr.bf16.mxu0 %v3712_v1  ;;  %1549 = vmatprep.subr.bf16.mxu1 %v3715_v2  ;;  %v3794_v1 = vld [vmem:[#allocation5 + $0x580] ss:$16 sps:$4 sm:$0xff]   ;;  %v3797_v2 = vld [vmem:[#allocation5 + $0x588] ss:$16 sps:$4 sm:$0xff]  }
  0xc5   :  { %1378 = vmatpush1.bf16.msra.mxu0 %v3710_v3  ;;  %1550 = vmatpush1.bf16.msra.mxu1 %v3713_v4  ;;  %v3802_v3 = vld [vmem:[#allocation5 + $0x5a4] ss:$16 sps:$4 sm:$0xff]   ;;  %v3805_v4 = vld [vmem:[#allocation5 + $0x5ac] ss:$16 sps:$4 sm:$0xff]  }
  0xc6   :  { %1379 = vmatprep.subr.bf16.mxu0 %v3718_v5  ;;  %1551 = vmatprep.subr.bf16.mxu1 %v3721_v6  ;;  %v3800_v5 = vld [vmem:[#allocation5 + $0x5a0] ss:$16 sps:$4 sm:$0xff]   ;;  %v3803_v6 = vld [vmem:[#allocation5 + $0x5a8] ss:$16 sps:$4 sm:$0xff]  }
  0xc9   :  { %1380 = vmatpush1.bf16.msra.mxu0 %v3716_v7  ;;  %1552 = vmatpush1.bf16.msra.mxu1 %v3719_v8  ;;  %v3808_v7 = vld [vmem:[#allocation5 + $0x5c4] ss:$16 sps:$4 sm:$0xff]   ;;  %v3811_v8 = vld [vmem:[#allocation5 + $0x5cc] ss:$16 sps:$4 sm:$0xff]  }
  0xca   :  { %1392 = vmatprep.subr.bf16.mxu0 %v3724_v9  ;;  %1564 = vmatprep.subr.bf16.mxu1 %v3727_v12  ;;  %v3806_v9 = vld [vmem:[#allocation5 + $0x5c0] ss:$16 sps:$4 sm:$0xff]   ;;  %v3817_v12 = vld [vmem:[#allocation5 + $0x5ec] ss:$16 sps:$4 sm:$0xff]  }
  0xcc   :  { %1382 = vmatmul.mubr.bf16.vlgmr.msra.gmra.mrb[0].mxu0 %v99_v15  ;;  %1554 = vmatmul.mubr.bf16.vlgmr.msra.gmra.mrb[0].mxu1 %v99_v15  ;;  %v87_v15 = vld [vmem:[#allocation2 + $0x20] sm:$0xff] }
  0xcd   :  { %1393 = vmatpush1.bf16.msra.mxu0 %v3722_v13  ;;  %1565 = vmatpush1.bf16.msra.mxu1 %v3725_v14  ;;  %v3812_v13 = vld [vmem:[#allocation5 + $0x5e0] ss:$16 sps:$4 sm:$0xff]   ;;  %v3815_v14 = vld [vmem:[#allocation5 + $0x5e8] ss:$16 sps:$4 sm:$0xff]  }
  0xce   :  { %1394 = vmatprep.subr.bf16.mxu0 %v3730_v16  ;;  %1566 = vmatprep.subr.bf16.mxu1 %v3733_v17  ;;  %v94_v16 = vld [vmem:[#allocation2 + $0x58] sm:$0xff]  ;;  %v3820_v17 = vld [vmem:[#allocation5 + $0x604] ss:$16 sps:$4 sm:$0xff]  }
  0xcf   :  { %1424 = vmatprep.mubr.bf16.mxu0 %v102_v23  ;;  %1596 = vmatprep.mubr.bf16.mxu1 %v102_v23  ;;  %v101_v21 = vpack.c.bf16 %v94_v16, %v87_v15  ;;  %v3829_v23 = vld [vmem:[#allocation7 + $0xc] ss:$16 sps:$4 sm:$0xff]   ;;  %v3902_v16 = vld [vmem:[#allocation7 + $0x1a0] ss:$16 sps:$4 sm:$0xff]  }
  0xd0   :  { %v3907_v15 = vld [vmem:[#allocation7 + $0x1ac] ss:$16 sps:$4 sm:$0xff]  }
  0xd1   :  { %1395 = vmatpush1.bf16.msra.mxu0 %v3728_v19  ;;  %1567 = vmatpush1.bf16.msra.mxu1 %v3731_v20  ;;  %v3818_v19 = vld [vmem:[#allocation5 + $0x600] ss:$16 sps:$4 sm:$0xff]   ;;  %v3821_v20 = vld [vmem:[#allocation5 + $0x608] ss:$16 sps:$4 sm:$0xff]  }
  0xd2   :  { %1396 = vmatprep.subr.bf16.mxu0 %v3736_v22  ;;  %1568 = vmatprep.subr.bf16.mxu1 %v3739_v24  ;;  %v3826_v22 = vld [vmem:[#allocation7 + $0x4] ss:$16 sps:$4 sm:$0xff]   ;;  %v4208_v24 = vmov 0  }
  0xd5   :  { %1397 = vmatpush1.bf16.msra.mxu0 %v3734_v25  ;;  %1569 = vmatpush1.bf16.msra.mxu1 %v3737_v26  ;;  %v89_v25 = vld [vmem:[#allocation2 + $0x30] sm:$0xff]  ;;  %v96_v26 = vld [vmem:[#allocation2 + $0x68] sm:$0xff] }
  0xd6   :  { %1398 = vmatprep.subr.bf16.mxu0 %v3742_v27  ;;  %1570 = vmatprep.subr.bf16.mxu1 %v3745_v28  ;;  %v3824_v27 = vld [vmem:[#allocation7] ss:$16 sps:$4 sm:$0xff]   ;;  %v3827_v28 = vld [vmem:[#allocation7 + $0x8] ss:$16 sps:$4 sm:$0xff]  }
  0xd9   :  { %1399 = vmatpush1.bf16.msra.mxu0 %v3740_v29  ;;  %1571 = vmatpush1.bf16.msra.mxu1 %v3743_v30  ;;  %v103_v29 = vpack.c.bf16 %v96_v26, %v89_v25  ;;  %v3832_v30 = vld [vmem:[#allocation7 + $0x24] ss:$16 sps:$4 sm:$0xff]   ;;  %v3917_v25 = vld [vmem:[#allocation7 + $0x1e8] ss:$16 sps:$4 sm:$0xff]  }
  0xda   :  { %1400 = vmatprep.subr.bf16.mxu0 %v3748_v31  ;;  %1572 = vmatprep.subr.bf16.mxu1 %v3751_v32  ;;  %v3835_v31 = vld [vmem:[#allocation7 + $0x2c] ss:$16 sps:$4 sm:$0xff]   ;;  %v3830_v32 = vld [vmem:[#allocation7 + $0x20] ss:$16 sps:$4 sm:$0xff]   ;;  %v3922_v26 = vld [vmem:[#allocation7 + $0x204] ss:$16 sps:$4 sm:$0xff]  }
  0xdd   :  { %1401 = vmatpush1.bf16.msra.mxu0 %v3746_v33  ;;  %1573 = vmatpush1.bf16.msra.mxu1 %v3749_v34  ;;  %v3833_v33 = vld [vmem:[#allocation7 + $0x28] ss:$16 sps:$4 sm:$0xff]   ;;  %v3838_v34 = vld [vmem:[#allocation7 + $0x44] ss:$16 sps:$4 sm:$0xff]  }
  0xde   :  { %1402 = vmatprep.subr.bf16.mxu0 %v3754_v35  ;;  %1574 = vmatprep.subr.bf16.mxu1 %v3757_v36  ;;  %v3841_v35 = vld [vmem:[#allocation7 + $0x4c] ss:$16 sps:$4 sm:$0xff]   ;;  %v3836_v36 = vld [vmem:[#allocation7 + $0x40] ss:$16 sps:$4 sm:$0xff]  }
  0xe1   :  { %1403 = vmatpush1.bf16.msra.mxu0 %v3752_v37  ;;  %1575 = vmatpush1.bf16.msra.mxu1 %v3755_v38  ;;  %v3839_v37 = vld [vmem:[#allocation7 + $0x48] ss:$16 sps:$4 sm:$0xff]   ;;  %v3844_v38 = vld [vmem:[#allocation7 + $0x64] ss:$16 sps:$4 sm:$0xff]  }
  0xe2   :  { %1404 = vmatprep.subr.bf16.mxu0 %v3760_v39  ;;  %1576 = vmatprep.subr.bf16.mxu1 %v3763_v40  ;;  %v3847_v39 = vld [vmem:[#allocation7 + $0x6c] ss:$16 sps:$4 sm:$0xff]   ;;  %v3842_v40 = vld [vmem:[#allocation7 + $0x60] ss:$16 sps:$4 sm:$0xff]  }
  0xe5   :  { %1405 = vmatpush1.bf16.msra.mxu0 %v3758_v41  ;;  %1577 = vmatpush1.bf16.msra.mxu1 %v3761_v42  ;;  %v3845_v41 = vld [vmem:[#allocation7 + $0x68] ss:$16 sps:$4 sm:$0xff]   ;;  %v3850_v42 = vld [vmem:[#allocation7 + $0x84] ss:$16 sps:$4 sm:$0xff]  }
  0xe6   :  { %1406 = vmatprep.subr.bf16.mxu0 %v3766_v43  ;;  %1578 = vmatprep.subr.bf16.mxu1 %v3769_v44  ;;  %v3853_v43 = vld [vmem:[#allocation7 + $0x8c] ss:$16 sps:$4 sm:$0xff]   ;;  %v3848_v44 = vld [vmem:[#allocation7 + $0x80] ss:$16 sps:$4 sm:$0xff]  }
  0xe9   :  { %1407 = vmatpush1.bf16.msra.mxu0 %v3764_v45  ;;  %1579 = vmatpush1.bf16.msra.mxu1 %v3767_v46  ;;  %v3851_v45 = vld [vmem:[#allocation7 + $0x88] ss:$16 sps:$4 sm:$0xff]   ;;  %v3856_v46 = vld [vmem:[#allocation7 + $0xa4] ss:$16 sps:$4 sm:$0xff]  }
  0xea   :  { %1408 = vmatprep.subr.bf16.mxu0 %v3772_v47  ;;  %1580 = vmatprep.subr.bf16.mxu1 %v3775_v48  ;;  %v3859_v47 = vld [vmem:[#allocation7 + $0xac] ss:$16 sps:$4 sm:$0xff]   ;;  %v3854_v48 = vld [vmem:[#allocation7 + $0xa0] ss:$16 sps:$4 sm:$0xff]  }
  0xed   :  { %1409 = vmatpush1.bf16.msra.mxu0 %v3770_v49  ;;  %1581 = vmatpush1.bf16.msra.mxu1 %v3773_v50  ;;  %v3857_v49 = vld [vmem:[#allocation7 + $0xa8] ss:$16 sps:$4 sm:$0xff]   ;;  %v3862_v50 = vld [vmem:[#allocation7 + $0xc4] ss:$16 sps:$4 sm:$0xff]  }
  0xee   :  { %1410 = vmatprep.subr.bf16.mxu0 %v3778_v51  ;;  %1582 = vmatprep.subr.bf16.mxu1 %v3781_v52  ;;  %v3865_v51 = vld [vmem:[#allocation7 + $0xcc] ss:$16 sps:$4 sm:$0xff]   ;;  %v3860_v52 = vld [vmem:[#allocation7 + $0xc0] ss:$16 sps:$4 sm:$0xff]  }
  0xf1   :  { %1411 = vmatpush1.bf16.msra.mxu0 %v3776_v53  ;;  %1583 = vmatpush1.bf16.msra.mxu1 %v3779_v54  ;;  %v3863_v53 = vld [vmem:[#allocation7 + $0xc8] ss:$16 sps:$4 sm:$0xff]   ;;  %v3868_v54 = vld [vmem:[#allocation7 + $0xe4] ss:$16 sps:$4 sm:$0xff]  }
  0xf2   :  { %1412 = vmatprep.subr.bf16.mxu0 %v3784_v55  ;;  %1584 = vmatprep.subr.bf16.mxu1 %v3787_v56  ;;  %v3871_v55 = vld [vmem:[#allocation7 + $0xec] ss:$16 sps:$4 sm:$0xff]   ;;  %v3866_v56 = vld [vmem:[#allocation7 + $0xe0] ss:$16 sps:$4 sm:$0xff]  }
  0xf5   :  { %1413 = vmatpush1.bf16.msra.mxu0 %v3782_v57  ;;  %1585 = vmatpush1.bf16.msra.mxu1 %v3785_v58  ;;  %v3869_v57 = vld [vmem:[#allocation7 + $0xe8] ss:$16 sps:$4 sm:$0xff]   ;;  %v3874_v58 = vld [vmem:[#allocation7 + $0x104] ss:$16 sps:$4 sm:$0xff]  }
  0xf6   :  { %1414 = vmatprep.subr.bf16.mxu0 %v3790_v59  ;;  %1586 = vmatprep.subr.bf16.mxu1 %v3793_v60  ;;  %v3877_v59 = vld [vmem:[#allocation7 + $0x10c] ss:$16 sps:$4 sm:$0xff]   ;;  %v3872_v60 = vld [vmem:[#allocation7 + $0x100] ss:$16 sps:$4 sm:$0xff]  }
  0xf9   :  { %1415 = vmatpush1.bf16.msra.mxu0 %v3788_v61  ;;  %1587 = vmatpush1.bf16.msra.mxu1 %v3791_v62  ;;  %v3875_v61 = vld [vmem:[#allocation7 + $0x108] ss:$16 sps:$4 sm:$0xff]   ;;  %v3880_v62 = vld [vmem:[#allocation7 + $0x124] ss:$16 sps:$4 sm:$0xff]  }
  0xfa   :  { %1416 = vmatprep.subr.bf16.mxu0 %v3796_v63  ;;  %1588 = vmatprep.subr.bf16.mxu1 %v3799_v0  ;;  %v3883_v63 = vld [vmem:[#allocation7 + $0x12c] ss:$16 sps:$4 sm:$0xff]   ;;  %v3878_v0 = vld [vmem:[#allocation7 + $0x120] ss:$16 sps:$4 sm:$0xff]  }
  0xfd   :  { %1417 = vmatpush1.bf16.msra.mxu0 %v3794_v1  ;;  %1589 = vmatpush1.bf16.msra.mxu1 %v3797_v2  ;;  %v3881_v1 = vld [vmem:[#allocation7 + $0x128] ss:$16 sps:$4 sm:$0xff]   ;;  %v3886_v2 = vld [vmem:[#allocation7 + $0x144] ss:$16 sps:$4 sm:$0xff]  }
  0xfe   :  { %1418 = vmatprep.subr.bf16.mxu0 %v3802_v3  ;;  %1590 = vmatprep.subr.bf16.mxu1 %v3805_v4  ;;  %v3889_v3 = vld [vmem:[#allocation7 + $0x14c] ss:$16 sps:$4 sm:$0xff]   ;;  %v3884_v4 = vld [vmem:[#allocation7 + $0x140] ss:$16 sps:$4 sm:$0xff]  }
 0x101   :  { %1419 = vmatpush1.bf16.msra.mxu0 %v3800_v5  ;;  %1591 = vmatpush1.bf16.msra.mxu1 %v3803_v6  ;;  %v3887_v5 = vld [vmem:[#allocation7 + $0x148] ss:$16 sps:$4 sm:$0xff]   ;;  %v3892_v6 = vld [vmem:[#allocation7 + $0x164] ss:$16 sps:$4 sm:$0xff]  }
 0x102   :  { %1420 = vmatprep.subr.bf16.mxu0 %v3808_v7  ;;  %1592 = vmatprep.subr.bf16.mxu1 %v3811_v8  ;;  %v3895_v7 = vld [vmem:[#allocation7 + $0x16c] ss:$16 sps:$4 sm:$0xff]   ;;  %v3890_v8 = vld [vmem:[#allocation7 + $0x160] ss:$16 sps:$4 sm:$0xff]  }
 0x105   :  { %1421 = vmatpush1.bf16.msra.mxu0 %v3806_v9  ;;  %1593 = vmatpush1.bf16.msra.mxu1 %v3809_v10  ;;  %v3893_v9 = vld [vmem:[#allocation7 + $0x168] ss:$16 sps:$4 sm:$0xff]   ;;  %v3898_v10 = vld [vmem:[#allocation7 + $0x184] ss:$16 sps:$4 sm:$0xff]  }
 0x106   :  { %1422 = vmatprep.subr.bf16.mxu0 %v3814_v11  ;;  %1594 = vmatprep.subr.bf16.mxu1 %v3817_v12  ;;  %v3901_v11 = vld [vmem:[#allocation7 + $0x18c] ss:$16 sps:$4 sm:$0xff]   ;;  %v3896_v12 = vld [vmem:[#allocation7 + $0x180] ss:$16 sps:$4 sm:$0xff]  }
 0x109   :  { %1423 = vmatpush1.bf16.msra.mxu0 %v3812_v13  ;;  %1595 = vmatpush1.bf16.msra.mxu1 %v3815_v14  ;;  %v3899_v13 = vld [vmem:[#allocation7 + $0x188] ss:$16 sps:$4 sm:$0xff]   ;;  %v3904_v14 = vld [vmem:[#allocation7 + $0x1a4] ss:$16 sps:$4 sm:$0xff]  }
 0x10a   :  { %1435 = vmatprep.subr.bf16.mxu0 %v3820_v17  ;;  %1607 = vmatprep.subr.bf16.mxu1 %v3823_v18  ;;  %v3905_v17 = vld [vmem:[#allocation7 + $0x1a8] ss:$16 sps:$4 sm:$0xff]   ;;  %v3910_v18 = vld [vmem:[#allocation7 + $0x1c4] ss:$16 sps:$4 sm:$0xff]  }
 0x10c   :  { %1425 = vmatmul.mubr.bf16.vlgmr.msra.gmra.mrb[0].mxu0 %v101_v21  ;;  %1597 = vmatmul.mubr.bf16.vlgmr.msra.gmra.mrb[0].mxu1 %v101_v21  ;;  %v3911_v21 = vld [vmem:[#allocation7 + $0x1c8] ss:$16 sps:$4 sm:$0xff]  }
 0x10d   :  { %1436 = vmatpush1.bf16.msra.mxu0 %v3818_v19  ;;  %1608 = vmatpush1.bf16.msra.mxu1 %v3821_v20  ;;  %v3913_v19 = vld [vmem:[#allocation7 + $0x1cc] ss:$16 sps:$4 sm:$0xff]   ;;  %v3908_v20 = vld [vmem:[#allocation7 + $0x1c0] ss:$16 sps:$4 sm:$0xff]  }
 0x10e   :  { %1467 = vmatprep.mubr.bf16.mxu0 %v4208_v24  ;;  %1639 = vmatprep.mubr.bf16.mxu1 %v4208_v24  ;;  %v3914_v24 = vld [vmem:[#allocation7 + $0x1e0] ss:$16 sps:$4 sm:$0xff]  }
 0x10f   :  { %2476 = vmatprep.subr.bf16.mxu0 %v3826_v22  ;;  %2562 = vmatprep.subr.bf16.mxu1 %v3829_v23  ;;  %v3916_v22 = vld [vmem:[#allocation7 + $0x1e4] ss:$16 sps:$4 sm:$0xff]   ;;  %v3919_v23 = vld [vmem:[#allocation7 + $0x1ec] ss:$16 sps:$4 sm:$0xff]  }
 0x118   :  { %3254 = vmatmul.mubr.msk.bf16.vlgmr.msra.gmra.mrb[0].mxu0 %vm1302_vm0, %v103_v29  ;;  %3255 = vmatmul.mubr.msk.bf16.vlgmr.msra.gmra.mrb[0].mxu1 %vm1302_vm0, %v103_v29 }
 0x119   :  { %2477 = vmatpush1.bf16.msra.mxu0 %v3824_v27  ;;  %2563 = vmatpush1.bf16.msra.mxu1 %v3827_v28  ;;  %v3925_v27 = vld [vmem:[#allocation7 + $0x20c] ss:$16 sps:$4 sm:$0xff]   ;;  %v302_v28 = vlaneseq }
 0x11a   :  { %2478 = vmatprep.subr.bf16.mxu0 %v3832_v30  ;;  %2564 = vmatprep.subr.bf16.mxu1 %v3835_v31 }
 0x11b   :  { %v4316_v29 = vshrl.u32 %v302_v28, 7 }
 0x11d   :  { %2479 = vmatpush1.bf16.msra.mxu0 %v3830_v32  ;;  %2565 = vmatpush1.bf16.msra.mxu1 %v3833_v33  ;;  %v304_v30 = vsub.s32 0, %v4316_v29  ;;  %v312_v31 = vsub.s32 2, %v4316_v29  ;;  %v300_v32 = vld [vmem:[%s4368_s2] sm:$0xf]  ;;  %v308_v33 = vsub.s32 1, %v4316_v29 }
 0x11e   :  { %2480 = vmatprep.subr.bf16.mxu0 %v3838_v34  ;;  %2566 = vmatprep.subr.bf16.mxu1 %v3841_v35  ;;  %v316_v34 = vsub.s32 3, %v4316_v29 }
 0x11f   :  { %v305_v35 = vrot.slane %v300_v32, %v304_v30 }
 0x121   :  { %2481 = vmatpush1.bf16.msra.mxu0 %v3836_v36  ;;  %2567 = vmatpush1.bf16.msra.mxu1 %v3839_v37  ;;  %v313_v36 = vrot.slane %v300_v32, %v312_v31  ;;  %v309_v37 = vrot.slane %v300_v32, %v308_v33 }
 0x122   :  { %2482 = vmatprep.subr.bf16.mxu0 %v3844_v38  ;;  %2568 = vmatprep.subr.bf16.mxu1 %v3847_v39  ;;  %v317_v38 = vrot.slane %v300_v32, %v316_v34  ;;  %v3928_v32 = vld [vmem:[#allocation7 + $0x224] ss:$16 sps:$4 sm:$0xff]  }
 0x125   :  { %2483 = vmatpush1.bf16.msra.mxu0 %v3842_v40  ;;  %2569 = vmatpush1.bf16.msra.mxu1 %v3845_v41 }
 0x126   :  { %2484 = vmatprep.subr.bf16.mxu0 %v3850_v42  ;;  %2570 = vmatprep.subr.bf16.mxu1 %v3853_v43 }
 0x129   :  { %2485 = vmatpush1.bf16.msra.mxu0 %v3848_v44  ;;  %2571 = vmatpush1.bf16.msra.mxu1 %v3851_v45 }
 0x12a   :  { %2486 = vmatprep.subr.bf16.mxu0 %v3856_v46  ;;  %2572 = vmatprep.subr.bf16.mxu1 %v3859_v47 }
 0x12d   :  { %2487 = vmatpush1.bf16.msra.mxu0 %v3854_v48  ;;  %2573 = vmatpush1.bf16.msra.mxu1 %v3857_v49 }
 0x12e   :  { %2488 = vmatprep.subr.bf16.mxu0 %v3862_v50  ;;  %2574 = vmatprep.subr.bf16.mxu1 %v3865_v51 }
 0x131   :  { %2489 = vmatpush1.bf16.msra.mxu0 %v3860_v52  ;;  %2575 = vmatpush1.bf16.msra.mxu1 %v3863_v53 }
 0x132   :  { %2490 = vmatprep.subr.bf16.mxu0 %v3868_v54  ;;  %2576 = vmatprep.subr.bf16.mxu1 %v3871_v55 }
 0x135   :  { %2491 = vmatpush1.bf16.msra.mxu0 %v3866_v56  ;;  %2577 = vmatpush1.bf16.msra.mxu1 %v3869_v57 }
 0x136   :  { %2492 = vmatprep.subr.bf16.mxu0 %v3874_v58  ;;  %2578 = vmatprep.subr.bf16.mxu1 %v3877_v59 }
 0x139   :  { %2493 = vmatpush1.bf16.msra.mxu0 %v3872_v60  ;;  %2579 = vmatpush1.bf16.msra.mxu1 %v3875_v61 }
 0x13a   :  { %2494 = vmatprep.subr.bf16.mxu0 %v3880_v62  ;;  %2580 = vmatprep.subr.bf16.mxu1 %v3883_v63 }
 0x13d   :  { %2495 = vmatpush1.bf16.msra.mxu0 %v3878_v0  ;;  %2581 = vmatpush1.bf16.msra.mxu1 %v3881_v1 }
 0x13e   :  { %2496 = vmatprep.subr.bf16.mxu0 %v3886_v2  ;;  %2582 = vmatprep.subr.bf16.mxu1 %v3889_v3 }
 0x141   :  { %2497 = vmatpush1.bf16.msra.mxu0 %v3884_v4  ;;  %2583 = vmatpush1.bf16.msra.mxu1 %v3887_v5 }
 0x142   :  { %2498 = vmatprep.subr.bf16.mxu0 %v3892_v6  ;;  %2584 = vmatprep.subr.bf16.mxu1 %v3895_v7 }
 0x145   :  { %2499 = vmatpush1.bf16.msra.mxu0 %v3890_v8  ;;  %2585 = vmatpush1.bf16.msra.mxu1 %v3893_v9 }
 0x146   :  { %2500 = vmatprep.subr.bf16.mxu0 %v3898_v10  ;;  %2586 = vmatprep.subr.bf16.mxu1 %v3901_v11 }
 0x149   :  { %2501 = vmatpush1.bf16.msra.mxu0 %v3896_v12  ;;  %2587 = vmatpush1.bf16.msra.mxu1 %v3899_v13 }
 0x14a   :  { %2502 = vmatprep.subr.bf16.mxu0 %v3904_v14  ;;  %2588 = vmatprep.subr.bf16.mxu1 %v3907_v15 }
 0x14d   :  { %2503 = vmatpush1.bf16.msra.mxu0 %v3902_v16  ;;  %2589 = vmatpush1.bf16.msra.mxu1 %v3905_v17 }
 0x14e   :  { %2504 = vmatprep.subr.bf16.mxu0 %v3910_v18  ;;  %2590 = vmatprep.subr.bf16.mxu1 %v3913_v19 }
 0x151   :  { %2505 = vmatpush1.bf16.msra.mxu0 %v3908_v20  ;;  %2591 = vmatpush1.bf16.msra.mxu1 %v3911_v21 }
 0x152   :  { %2506 = vmatprep.subr.bf16.mxu0 %v3916_v22  ;;  %2592 = vmatprep.subr.bf16.mxu1 %v3919_v23 }
 0x155   :  { %2507 = vmatpush1.bf16.msra.mxu0 %v3914_v24  ;;  %2593 = vmatpush1.bf16.msra.mxu1 %v3917_v25 }
 0x156   :  { %2519 = vmatprep.subr.bf16.mxu0 %v3922_v26  ;;  %2605 = vmatprep.subr.bf16.mxu1 %v3925_v27  ;;  %v3920_v26 = vld [vmem:[#allocation7 + $0x200] ss:$16 sps:$4 sm:$0xff]   ;;  %v3923_v27 = vld [vmem:[#allocation7 + $0x208] ss:$16 sps:$4 sm:$0xff]  }
 0x1eb   :  { %v1469_v39 = vpop.f32.mrb[0].mxu0  ;;  %v1641_v40 = vpop.f32.mrb[0].mxu1 }
 0x1ec   :  { %v3470_v41 = vadd.f32 %v1469_v39, %v305_v35  ;;  %v3474_v42 = vadd.f32 %v1641_v40, %v313_v36  ;;  %v1471_v43 = vpop.f32.mrb[1].mxu0  ;;  %v1643_v44 = vpop.f32.mrb[1].mxu1  ;;  %v3937_v39 = vld [vmem:[#allocation7 + $0x24c] ss:$16 sps:$4 sm:$0xff]   ;;  %v3932_v40 = vld [vmem:[#allocation7 + $0x240] ss:$16 sps:$4 sm:$0xff]  }
 0x1ed   :  { %v3471_v45 = vadd.f32 %v1471_v43, %v309_v37  ;;  %v3475_v46 = vadd.f32 %v1643_v44, %v317_v38  ;;  %v1473_v47 = vpop.f32.mrb[2].mxu0  ;;  %v1645_v48 = vpop.f32.mrb[2].mxu1  ;;  %v3943_v43 = vld [vmem:[#allocation7 + $0x26c] ss:$16 sps:$4 sm:$0xff]   ;;  %v3938_v44 = vld [vmem:[#allocation7 + $0x260] ss:$16 sps:$4 sm:$0xff]  }
 0x1ee   :  { %v1650_v49 = vmul.f32 0.5, %v3470_v41  ;;  %v1652_v50 = vmul.f32 0.5, %v3474_v42  ;;  %v3472_v51 = vadd.f32 %v1473_v47, %v305_v35  ;;  %v3476_v52 = vadd.f32 %v1645_v48, %v313_v36  ;;  %v1475_v53 = vpop.f32.mrb[3].mxu0  ;;  %v1647_v54 = vpop.f32.mrb[3].mxu1  ;;  %v3931_v35 = vld [vmem:[#allocation7 + $0x22c] ss:$16 sps:$4 sm:$0xff]  }
 0x1ef   :  { %v1651_v55 = vmul.f32 0.5, %v3471_v45  ;;  %v1653_v56 = vmul.f32 0.5, %v3475_v46  ;;  %v3473_v57 = vadd.f32 %v1475_v53, %v309_v37  ;;  %v3477_v58 = vadd.f32 %v1647_v54, %v317_v38  ;;  %v3926_v36 = vld [vmem:[#allocation7 + $0x220] ss:$16 sps:$4 sm:$0xff]   ;;  %v3929_v37 = vld [vmem:[#allocation7 + $0x228] ss:$16 sps:$4 sm:$0xff]  }
 0x1f0   :  { %4048 = vtanh.f32 %v1650_v49  ;;  %v1654_v59 = vmul.f32 0.5, %v3472_v51  ;;  %v1656_v60 = vmul.f32 0.5, %v3476_v52  ;;  %v3934_v38 = vld [vmem:[#allocation7 + $0x244] ss:$16 sps:$4 sm:$0xff]   ;;  %v3935_v41 = vld [vmem:[#allocation7 + $0x248] ss:$16 sps:$4 sm:$0xff]  }
 0x1f1   :  { %4050 = vtanh.f32 %v1652_v50  ;;  %v1655_v61 = vmul.f32 0.5, %v3473_v57  ;;  %v1657_v62 = vmul.f32 0.5, %v3477_v58  ;;  %v3940_v42 = vld [vmem:[#allocation7 + $0x264] ss:$16 sps:$4 sm:$0xff]   ;;  %v3941_v45 = vld [vmem:[#allocation7 + $0x268] ss:$16 sps:$4 sm:$0xff]  }
 0x1f2   :  { %4052 = vtanh.f32 %v1651_v55  ;;  %v3946_v46 = vld [vmem:[#allocation7 + $0x284] ss:$16 sps:$4 sm:$0xff]   ;;  %v3949_v47 = vld [vmem:[#allocation7 + $0x28c] ss:$16 sps:$4 sm:$0xff]   ;;  %v3944_v48 = vld [vmem:[#allocation7 + $0x280] ss:$16 sps:$4 sm:$0xff]  }
 0x1f3   :  { %4054 = vtanh.f32 %v1653_v56  ;;  %v3947_v49 = vld [vmem:[#allocation7 + $0x288] ss:$16 sps:$4 sm:$0xff]   ;;  %v3952_v50 = vld [vmem:[#allocation7 + $0x2a4] ss:$16 sps:$4 sm:$0xff]   ;;  %v3955_v51 = vld [vmem:[#allocation7 + $0x2ac] ss:$16 sps:$4 sm:$0xff]  }
 0x1f4   :  { %4056 = vtanh.f32 %v1654_v59  ;;  %v3950_v52 = vld [vmem:[#allocation7 + $0x2a0] ss:$16 sps:$4 sm:$0xff]   ;;  %v3953_v53 = vld [vmem:[#allocation7 + $0x2a8] ss:$16 sps:$4 sm:$0xff]   ;;  %v3958_v54 = vld [vmem:[#allocation7 + $0x2c4] ss:$16 sps:$4 sm:$0xff]  }
 0x1f5   :  { %4058 = vtanh.f32 %v1656_v60  ;;  %v3961_v55 = vld [vmem:[#allocation7 + $0x2cc] ss:$16 sps:$4 sm:$0xff]   ;;  %v3956_v56 = vld [vmem:[#allocation7 + $0x2c0] ss:$16 sps:$4 sm:$0xff]   ;;  %v3959_v57 = vld [vmem:[#allocation7 + $0x2c8] ss:$16 sps:$4 sm:$0xff]  }
 0x1f6   :  { %4060 = vtanh.f32 %v1655_v61  ;;  %v3964_v58 = vld [vmem:[#allocation7 + $0x2e4] ss:$16 sps:$4 sm:$0xff]   ;;  %v3967_v59 = vld [vmem:[#allocation7 + $0x2ec] ss:$16 sps:$4 sm:$0xff]   ;;  %v3962_v60 = vld [vmem:[#allocation7 + $0x2e0] ss:$16 sps:$4 sm:$0xff]  }
 0x1f7   :  { %4062 = vtanh.f32 %v1657_v62  ;;  %v3965_v61 = vld [vmem:[#allocation7 + $0x2e8] ss:$16 sps:$4 sm:$0xff]   ;;  %v3970_v62 = vld [vmem:[#allocation7 + $0x304] ss:$16 sps:$4 sm:$0xff]  }
 0x1fa   :  { %v4049_v63 = vpop.eup %4048 }
 0x1fb   :  { %v4051_v0 = vpop.eup %4050  ;;  %v1666_v3 = vadd.f32 1.0, %v4049_v63  ;;  %v3973_v63 = vld [vmem:[#allocation7 + $0x30c] ss:$16 sps:$4 sm:$0xff]  }
 0x1fc   :  { %v4053_v1 = vpop.eup %4052  ;;  %v1668_v5 = vadd.f32 1.0, %v4051_v0  ;;  %v3968_v0 = vld [vmem:[#allocation7 + $0x300] ss:$16 sps:$4 sm:$0xff]  }
 0x1fd   :  { %v4055_v2 = vpop.eup %4054  ;;  %v1667_v7 = vadd.f32 1.0, %v4053_v1  ;;  %v1674_v13 = vmul.f32 0.5, %v1666_v3  ;;  %v3971_v1 = vld [vmem:[#allocation7 + $0x308] ss:$16 sps:$4 sm:$0xff]   ;;  %v3979_v3 = vld [vmem:[#allocation7 + $0x32c] ss:$16 sps:$4 sm:$0xff]  }
 0x1fe   :  { %v4057_v4 = vpop.eup %4056  ;;  %v1669_v10 = vadd.f32 1.0, %v4055_v2  ;;  %v1676_v16 = vmul.f32 0.5, %v1668_v5  ;;  %v3976_v2 = vld [vmem:[#allocation7 + $0x324] ss:$16 sps:$4 sm:$0xff]   ;;  %v3977_v5 = vld [vmem:[#allocation7 + $0x328] ss:$16 sps:$4 sm:$0xff]  }
 0x1ff   :  { %v4059_v6 = vpop.eup %4058  ;;  %v1670_v8 = vadd.f32 1.0, %v4057_v4  ;;  %v1675_v19 = vmul.f32 0.5, %v1667_v7  ;;  %v3974_v4 = vld [vmem:[#allocation7 + $0x320] ss:$16 sps:$4 sm:$0xff]   ;;  %v3985_v7 = vld [vmem:[#allocation7 + $0x34c] ss:$16 sps:$4 sm:$0xff]  }
 0x200   :  { %v4061_v9 = vpop.eup %4060  ;;  %v1672_v11 = vadd.f32 1.0, %v4059_v6  ;;  %v1677_v22 = vmul.f32 0.5, %v1669_v10  ;;  %v3982_v6 = vld [vmem:[#allocation7 + $0x344] ss:$16 sps:$4 sm:$0xff]  }
 0x201   :  { %v4063_v12 = vpop.eup %4062  ;;  %v1678_v14 = vmul.f32 0.5, %v1670_v8  ;;  %v1671_v15 = vadd.f32 1.0, %v4061_v9  ;;  %v3980_v8 = vld [vmem:[#allocation7 + $0x340] ss:$16 sps:$4 sm:$0xff]   ;;  %v3983_v9 = vld [vmem:[#allocation7 + $0x348] ss:$16 sps:$4 sm:$0xff]  }
 0x202   :  { %v1680_v17 = vmul.f32 0.5, %v1672_v11  ;;  %v1673_v18 = vadd.f32 1.0, %v4063_v12  ;;  %v3988_v10 = vld [vmem:[#allocation7 + $0x364] ss:$16 sps:$4 sm:$0xff]   ;;  %v3991_v11 = vld [vmem:[#allocation7 + $0x36c] ss:$16 sps:$4 sm:$0xff]  }
 0x203   :  { %v1682_v20 = vpack.c.bf16 %v1678_v14, %v1674_v13  ;;  %v1679_v21 = vmul.f32 0.5, %v1671_v15  ;;  %v3986_v12 = vld [vmem:[#allocation7 + $0x360] ss:$16 sps:$4 sm:$0xff]   ;;  %v3989_v13 = vld [vmem:[#allocation7 + $0x368] ss:$16 sps:$4 sm:$0xff]  }
 0x204   :  { %v4333_v23 = vpack.c.bf16 %v1680_v17, %v1676_v16  ;;  %v1681_v24 = vmul.f32 0.5, %v1673_v18  ;;  %v3994_v14 = vld [vmem:[#allocation7 + $0x384] ss:$16 sps:$4 sm:$0xff]   ;;  %v3997_v15 = vld [vmem:[#allocation7 + $0x38c] ss:$16 sps:$4 sm:$0xff]  }
 0x205   :  { %v1683_v25 = vpack.c.bf16 %v1679_v21, %v1675_v19  ;;  %v3992_v16 = vld [vmem:[#allocation7 + $0x380] ss:$16 sps:$4 sm:$0xff]   ;;  %v3995_v17 = vld [vmem:[#allocation7 + $0x388] ss:$16 sps:$4 sm:$0xff]   ;;  %v4000_v18 = vld [vmem:[#allocation7 + $0x3a4] ss:$16 sps:$4 sm:$0xff]  }
 0x206   :  { %v1685_v28 = vpack.c.bf16 %v1681_v24, %v1677_v22  ;;  %v4003_v19 = vld [vmem:[#allocation7 + $0x3ac] ss:$16 sps:$4 sm:$0xff]   ;;  %v4001_v21 = vld [vmem:[#allocation7 + $0x3a8] ss:$16 sps:$4 sm:$0xff]   ;;  %v4006_v22 = vld [vmem:[#allocation7 + $0x3c4] ss:$16 sps:$4 sm:$0xff]  }
 0x207   :  { %2508 = vmatprep.mubr.bf16.mxu0 %v1683_v25  ;;  %2594 = vmatprep.mubr.bf16.mxu1 %v1683_v25  ;;  %v4009_v24 = vld [vmem:[#allocation7 + $0x3cc] ss:$16 sps:$4 sm:$0xff]   ;;  %v4004_v25 = vld [vmem:[#allocation7 + $0x3c0] ss:$16 sps:$4 sm:$0xff]  }
 0x208   :  { %2509 = vmatmul.mubr.bf16.vlgmr.msra.gmra.mrb[4].mxu0 %v1682_v20  ;;  %2595 = vmatmul.mubr.bf16.vlgmr.msra.gmra.mrb[4].mxu1 %v1682_v20  ;;  %v3998_v20 = vld [vmem:[#allocation7 + $0x3a0] ss:$16 sps:$4 sm:$0xff]  }
 0x209   :  { %2520 = vmatpush1.bf16.msra.mxu0 %v3920_v26  ;;  %2606 = vmatpush1.bf16.msra.mxu1 %v3923_v27  ;;  %v4007_v26 = vld [vmem:[#allocation7 + $0x3c8] ss:$16 sps:$4 sm:$0xff]   ;;  %v4012_v27 = vld [vmem:[#allocation7 + $0x3e4] ss:$16 sps:$4 sm:$0xff]  }
 0x20a   :  { %2551 = vmatprep.mubr.bf16.mxu0 %v1685_v28  ;;  %2637 = vmatprep.mubr.bf16.mxu1 %v1685_v28  ;;  %v4015_v28 = vld [vmem:[#allocation7 + $0x3ec] ss:$16 sps:$4 sm:$0xff]  }
 0x20b   :  { %2521 = vmatprep.subr.bf16.mxu0 %v3928_v32  ;;  %2607 = vmatprep.subr.bf16.mxu1 %v3931_v35  ;;  %v4010_v32 = vld [vmem:[#allocation7 + $0x3e0] ss:$16 sps:$4 sm:$0xff]   ;;  %v4013_v35 = vld [vmem:[#allocation7 + $0x3e8] ss:$16 sps:$4 sm:$0xff]  }
 0x20d   :  { %2522 = vmatpush1.bf16.msra.mxu0 %v3926_v36  ;;  %2608 = vmatpush1.bf16.msra.mxu1 %v3929_v37  ;;  %v4016_v36 = vld [vmem:[#allocation8 + $0x40] sm:$0xff]  }
 0x20e   :  { %2523 = vmatprep.subr.bf16.mxu0 %v3934_v38  ;;  %2609 = vmatprep.subr.bf16.mxu1 %v3937_v39  ;;  %v4017_v37 = vld [vmem:[#allocation8 + $0xc0] sm:$0xff]  }
 0x20f   :  { %v4018_v38 = vld [vmem:[#allocation8] sm:$0xff]  }
 0x210   :  { %v4019_v39 = vld [vmem:[#allocation8 + $0x80] sm:$0xff]  }
 0x211   :  { %2524 = vmatpush1.bf16.msra.mxu0 %v3932_v40  ;;  %2610 = vmatpush1.bf16.msra.mxu1 %v3935_v41  ;;  %v4020_v40 = vld [vmem:[#allocation8 + $0x48] sm:$0xff]  }
 0x212   :  { %2525 = vmatprep.subr.bf16.mxu0 %v3940_v42  ;;  %2611 = vmatprep.subr.bf16.mxu1 %v3943_v43  ;;  %v4021_v41 = vld [vmem:[#allocation8 + $0xc8] sm:$0xff]  }
 0x213   :  { %v4022_v42 = vld [vmem:[#allocation8 + $0x8] sm:$0xff]  }
 0x214   :  { %v4023_v43 = vld [vmem:[#allocation8 + $0x88] sm:$0xff]  }
 0x215   :  { %2526 = vmatpush1.bf16.msra.mxu0 %v3938_v44  ;;  %2612 = vmatpush1.bf16.msra.mxu1 %v3941_v45  ;;  %v4024_v44 = vld [vmem:[#allocation8 + $0x50] sm:$0xff]  }
 0x216   :  { %2527 = vmatprep.subr.bf16.mxu0 %v3946_v46  ;;  %2613 = vmatprep.subr.bf16.mxu1 %v3949_v47  ;;  %v4025_v45 = vld [vmem:[#allocation8 + $0xd0] sm:$0xff]  }
 0x217   :  { %v4026_v46 = vld [vmem:[#allocation8 + $0x10] sm:$0xff]  }
 0x218   :  { %v4027_v47 = vld [vmem:[#allocation8 + $0x90] sm:$0xff]  }
 0x219   :  { %2528 = vmatpush1.bf16.msra.mxu0 %v3944_v48  ;;  %2614 = vmatpush1.bf16.msra.mxu1 %v3947_v49  ;;  %v4028_v48 = vld [vmem:[#allocation8 + $0x58] sm:$0xff]  }
 0x21a   :  { %2529 = vmatprep.subr.bf16.mxu0 %v3952_v50  ;;  %2615 = vmatprep.subr.bf16.mxu1 %v3955_v51  ;;  %v4029_v49 = vld [vmem:[#allocation8 + $0xd8] sm:$0xff]   ;;  %v4032_v51 = vld [vmem:[#allocation8 + $0x60] sm:$0xff]  }
 0x21b   :  { %v4030_v50 = vld [vmem:[#allocation8 + $0x18] sm:$0xff]  }
 0x21d   :  { %2530 = vmatpush1.bf16.msra.mxu0 %v3950_v52  ;;  %2616 = vmatpush1.bf16.msra.mxu1 %v3953_v53  ;;  %v4033_v52 = vld [vmem:[#allocation8 + $0xe0] sm:$0xff]  }
 0x21e   :  { %2531 = vmatprep.subr.bf16.mxu0 %v3958_v54  ;;  %2617 = vmatprep.subr.bf16.mxu1 %v3961_v55  ;;  %v4034_v53 = vld [vmem:[#allocation8 + $0x20] sm:$0xff]   ;;  %v4036_v55 = vld [vmem:[#allocation8 + $0x68] sm:$0xff]  }
 0x21f   :  { %v4035_v54 = vld [vmem:[#allocation8 + $0xa0] sm:$0xff]  }
 0x221   :  { %2532 = vmatpush1.bf16.msra.mxu0 %v3956_v56  ;;  %2618 = vmatpush1.bf16.msra.mxu1 %v3959_v57  ;;  %v4037_v56 = vld [vmem:[#allocation8 + $0xe8] sm:$0xff]  }
 0x222   :  { %2533 = vmatprep.subr.bf16.mxu0 %v3964_v58  ;;  %2619 = vmatprep.subr.bf16.mxu1 %v3967_v59  ;;  %v4038_v57 = vld [vmem:[#allocation8 + $0x28] sm:$0xff]   ;;  %v4040_v59 = vld [vmem:[#allocation8 + $0x70] sm:$0xff]  }
 0x223   :  { %v4039_v58 = vld [vmem:[#allocation8 + $0xa8] sm:$0xff]  }
 0x225   :  { %2534 = vmatpush1.bf16.msra.mxu0 %v3962_v60  ;;  %2620 = vmatpush1.bf16.msra.mxu1 %v3965_v61  ;;  %v4041_v60 = vld [vmem:[#allocation8 + $0xf0] sm:$0xff]  }
 0x226   :  { %2535 = vmatprep.subr.bf16.mxu0 %v3970_v62  ;;  %2621 = vmatprep.subr.bf16.mxu1 %v3973_v63  ;;  %v4042_v61 = vld [vmem:[#allocation8 + $0x30] sm:$0xff]   ;;  %v4044_v63 = vld [vmem:[#allocation8 + $0x78] sm:$0xff]  }
 0x227   :  { %v4043_v62 = vld [vmem:[#allocation8 + $0xb0] sm:$0xff]  }
 0x229   :  { %2536 = vmatpush1.bf16.msra.mxu0 %v3968_v0  ;;  %2622 = vmatpush1.bf16.msra.mxu1 %v3971_v1  ;;  %v4045_v0 = vld [vmem:[#allocation8 + $0xf8] sm:$0xff]  }
 0x22a   :  { %2537 = vmatprep.subr.bf16.mxu0 %v3976_v2  ;;  %2623 = vmatprep.subr.bf16.mxu1 %v3979_v3  ;;  %v4046_v1 = vld [vmem:[#allocation8 + $0x38] sm:$0xff]   ;;  %v1814_v3 = vld [vmem:[%s4370_s4] sm:$0xf] }
 0x22b   :  { %v4047_v2 = vld [vmem:[#allocation8 + $0xb8] sm:$0xff]  }
 0x22d   :  { %2538 = vmatpush1.bf16.msra.mxu0 %v3974_v4  ;;  %2624 = vmatpush1.bf16.msra.mxu1 %v3977_v5  ;;  %v1819_v4 = vrot.slane %v1814_v3, %v304_v30  ;;  %v1827_v5 = vrot.slane %v1814_v3, %v312_v31 }
 0x22e   :  { %2539 = vmatprep.subr.bf16.mxu0 %v3982_v6  ;;  %2625 = vmatprep.subr.bf16.mxu1 %v3985_v7  ;;  %v1823_v6 = vrot.slane %v1814_v3, %v308_v33  ;;  %v1831_v7 = vrot.slane %v1814_v3, %v316_v34 }
 0x231   :  { %2540 = vmatpush1.bf16.msra.mxu0 %v3980_v8  ;;  %2626 = vmatpush1.bf16.msra.mxu1 %v3983_v9 }
 0x232   :  { %2541 = vmatprep.subr.bf16.mxu0 %v3988_v10  ;;  %2627 = vmatprep.subr.bf16.mxu1 %v3991_v11 }
 0x235   :  { %2542 = vmatpush1.bf16.msra.mxu0 %v3986_v12  ;;  %2628 = vmatpush1.bf16.msra.mxu1 %v3989_v13 }
 0x236   :  { %2543 = vmatprep.subr.bf16.mxu0 %v3994_v14  ;;  %2629 = vmatprep.subr.bf16.mxu1 %v3997_v15 }
 0x239   :  { %2544 = vmatpush1.bf16.msra.mxu0 %v3992_v16  ;;  %2630 = vmatpush1.bf16.msra.mxu1 %v3995_v17 }
 0x23a   :  { %2545 = vmatprep.subr.bf16.mxu0 %v4000_v18  ;;  %2631 = vmatprep.subr.bf16.mxu1 %v4003_v19 }
 0x23d   :  { %2546 = vmatpush1.bf16.msra.mxu0 %v3998_v20  ;;  %2632 = vmatpush1.bf16.msra.mxu1 %v4001_v21 }
 0x23e   :  { %2547 = vmatprep.subr.bf16.mxu0 %v4006_v22  ;;  %2633 = vmatprep.subr.bf16.mxu1 %v4009_v24 }
 0x241   :  { %2548 = vmatpush1.bf16.msra.mxu0 %v4004_v25  ;;  %2634 = vmatpush1.bf16.msra.mxu1 %v4007_v26 }
 0x242   :  { %2549 = vmatprep.subr.bf16.mxu0 %v4012_v27  ;;  %2635 = vmatprep.subr.bf16.mxu1 %v4015_v28 }
 0x245   :  { %2550 = vmatpush1.bf16.msra.mxu0 %v4010_v32  ;;  %2636 = vmatpush1.bf16.msra.mxu1 %v4013_v35 }
 0x246   :  { %3426 = vmatprep.subr.bf16.mxu0 %v4016_v36  ;;  %3448 = vmatprep.subr.bf16.mxu1 %v4017_v37 }
 0x248   :  { %2552 = vmatmul.mubr.bf16.vlgmr.msra.gmra.mrb[4].mxu0 %v4333_v23  ;;  %2638 = vmatmul.mubr.bf16.vlgmr.msra.gmra.mrb[4].mxu1 %v4333_v23  ;;  %v4031_v23 = vld [vmem:[#allocation8 + $0x98] sm:$0xff]  }
 0x249   :  { %3427 = vmatpush3.bf16.msra.mxu0 %v4018_v38  ;;  %3449 = vmatpush3.bf16.msra.mxu1 %v4019_v39 }
 0x24a   :  { %3428 = vmatprep.subr.bf16.mxu0 %v4020_v40  ;;  %3450 = vmatprep.subr.bf16.mxu1 %v4021_v41 }
 0x24d   :  { %3429 = vmatpush3.bf16.msra.mxu0 %v4022_v42  ;;  %3451 = vmatpush3.bf16.msra.mxu1 %v4023_v43 }
 0x24e   :  { %3430 = vmatprep.subr.bf16.mxu0 %v4024_v44  ;;  %3452 = vmatprep.subr.bf16.mxu1 %v4025_v45 }
 0x251   :  { %3431 = vmatpush3.bf16.msra.mxu0 %v4026_v46  ;;  %3453 = vmatpush3.bf16.msra.mxu1 %v4027_v47 }
 0x252   :  { %3432 = vmatprep.subr.bf16.mxu0 %v4028_v48  ;;  %3454 = vmatprep.subr.bf16.mxu1 %v4029_v49 }
 0x255   :  { %3433 = vmatpush3.bf16.msra.mxu0 %v4030_v50  ;;  %3455 = vmatpush3.bf16.msra.mxu1 %v4031_v23 }
 0x256   :  { %3434 = vmatprep.subr.bf16.mxu0 %v4032_v51  ;;  %3456 = vmatprep.subr.bf16.mxu1 %v4033_v52 }
 0x259   :  { %3435 = vmatpush3.bf16.msra.mxu0 %v4034_v53  ;;  %3457 = vmatpush3.bf16.msra.mxu1 %v4035_v54 }
 0x25a   :  { %3436 = vmatprep.subr.bf16.mxu0 %v4036_v55  ;;  %3458 = vmatprep.subr.bf16.mxu1 %v4037_v56 }
 0x25d   :  { %3437 = vmatpush3.bf16.msra.mxu0 %v4038_v57  ;;  %3459 = vmatpush3.bf16.msra.mxu1 %v4039_v58 }
 0x25e   :  { %3438 = vmatprep.subr.bf16.mxu0 %v4040_v59  ;;  %3460 = vmatprep.subr.bf16.mxu1 %v4041_v60 }
 0x261   :  { %3439 = vmatpush3.bf16.msra.mxu0 %v4042_v61  ;;  %3461 = vmatpush3.bf16.msra.mxu1 %v4043_v62  ;;  %v3384_v62 = vld [vmem:[%s4372_s6] ss:$0 sm:$0xff]  ;;  %s4168_s6 = scalar_lea.vmem %s3045_s9, 128 }
 0x262   :  { %3440 = vmatprep.subr.bf16.mxu0 %v4044_v63  ;;  %3462 = vmatprep.subr.bf16.mxu1 %v4045_v0  ;;  %p4169_p4 = scmp.ne.s32.totalorder %s3045_s9, %s4168_s6  ;;  %p4174_p6 = scmp.lt.s32.totalorder %s4168_s6, %s4168_s6 }
 0x264   :  { %p4175_p7 = por %p4174_p6, %p4173_p5 }
 0x265   :  { %3441 = vmatpush3.bf16.msra.mxu0 %v4046_v1  ;;  %3463 = vmatpush3.bf16.msra.mxu1 %v4047_v2 }
 0x266   :  { %p4176_p8 = pnand %p4175_p7, %p4169_p4 }
 0x31b   :  { %v2553_v8 = vpop.f32.mrb[4].mxu0  ;;  %v2639_v9 = vpop.f32.mrb[4].mxu1 }
 0x31c   :  { %v3478_v10 = vadd.f32 %v2553_v8, %v1819_v4  ;;  %v3482_v11 = vadd.f32 %v2639_v9, %v1827_v5  ;;  %v2555_v12 = vpop.f32.mrb[5].mxu0  ;;  %v2641_v13 = vpop.f32.mrb[5].mxu1 }
 0x31d   :  { %v3479_v14 = vadd.f32 %v2555_v12, %v1823_v6  ;;  %v3483_v15 = vadd.f32 %v2641_v13, %v1831_v7  ;;  %v2557_v16 = vpop.f32.mrb[6].mxu0  ;;  %v2643_v17 = vpop.f32.mrb[6].mxu1 }
 0x31e   :  { %v2648_v30 = vmul.f32 0.5, %v3478_v10  ;;  %v2650_v18 = vmul.f32 0.5, %v3482_v11  ;;  %v3480_v19 = vadd.f32 %v2557_v16, %v1819_v4  ;;  %v3484_v31 = vadd.f32 %v2643_v17, %v1827_v5  ;;  %v2559_v20 = vpop.f32.mrb[7].mxu0  ;;  %v2645_v21 = vpop.f32.mrb[7].mxu1 }
 0x31f   :  { %v2649_v33 = vmul.f32 0.5, %v3479_v14  ;;  %v2651_v22 = vmul.f32 0.5, %v3483_v15  ;;  %v3481_v29 = vadd.f32 %v2559_v20, %v1823_v6  ;;  %v3485_v34 = vadd.f32 %v2645_v21, %v1831_v7 }
 0x320   :  { %4064 = vtanh.f32 %v2648_v30  ;;  %v2652_v24 = vmul.f32 0.5, %v3480_v19  ;;  %v2654_v25 = vmul.f32 0.5, %v3484_v31 }
 0x321   :  { %4066 = vtanh.f32 %v2650_v18  ;;  %v2653_v26 = vmul.f32 0.5, %v3481_v29  ;;  %v2655_v27 = vmul.f32 0.5, %v3485_v34 }
 0x322   :  { %4068 = vtanh.f32 %v2649_v33 }
 0x323   :  { %4070 = vtanh.f32 %v2651_v22 }
 0x324   :  { %4072 = vtanh.f32 %v2652_v24 }
 0x325   :  { %4074 = vtanh.f32 %v2654_v25 }
 0x326   :  { %4076 = vtanh.f32 %v2653_v26 }
 0x327   :  { %4078 = vtanh.f32 %v2655_v27 }
 0x32a   :  { %v4065_v28 = vpop.eup %4064 }
 0x32b   :  { %v4067_v32 = vpop.eup %4066  ;;  %v2664_v37 = vadd.f32 1.0, %v4065_v28 }
 0x32c   :  { %v4069_v35 = vpop.eup %4068  ;;  %v2666_v39 = vadd.f32 1.0, %v4067_v32 }
 0x32d   :  { %v4071_v36 = vpop.eup %4070  ;;  %v2665_v41 = vadd.f32 1.0, %v4069_v35  ;;  %v2672_v47 = vmul.f32 0.5, %v2664_v37 }
 0x32e   :  { %v4073_v38 = vpop.eup %4072  ;;  %v2667_v44 = vadd.f32 1.0, %v4071_v36  ;;  %v2674_v50 = vmul.f32 0.5, %v2666_v39 }
 0x32f   :  { %v4075_v40 = vpop.eup %4074  ;;  %v2668_v42 = vadd.f32 1.0, %v4073_v38  ;;  %v2673_v52 = vmul.f32 0.5, %v2665_v41 }
 0x330   :  { %v4077_v43 = vpop.eup %4076  ;;  %v2670_v45 = vadd.f32 1.0, %v4075_v40  ;;  %v2675_v55 = vmul.f32 0.5, %v2667_v44 }
 0x331   :  { %v4079_v46 = vpop.eup %4078  ;;  %v2676_v48 = vmul.f32 0.5, %v2668_v42  ;;  %v2669_v49 = vadd.f32 1.0, %v4077_v43 }
 0x332   :  { %v2678_v23 = vmul.f32 0.5, %v2670_v45  ;;  %v2671_v51 = vadd.f32 1.0, %v4079_v46 }
 0x333   :  { %v2680_v53 = vpack.c.bf16 %v2676_v48, %v2672_v47  ;;  %v2677_v54 = vmul.f32 0.5, %v2669_v49 }
 0x334   :  { %v2682_v56 = vpack.c.bf16 %v2678_v23, %v2674_v50  ;;  %v2679_v57 = vmul.f32 0.5, %v2671_v51 }
 0x335   :  { %v2681_v58 = vpack.c.bf16 %v2677_v54, %v2673_v52 }
 0x336   :  { %v2683_v59 = vpack.c.bf16 %v2679_v57, %v2675_v55 }
 0x337   :  { %2979 = vmatprep.mubr.bf16.mxu0 %v2681_v58 }
 0x338   :  { %3020 = vmatprep.mubr.bf16.mxu1 %v2683_v59  ;;  %2980 = vmatmul.mubr.bf16.vlgmr.msra.gmra.mrb[8].mxu0 %v2680_v53 }
 0x339   :  { %3021 = vmatmul.mubr.bf16.vlgmr.msra.gmra.mrb[8].mxu1 %v2682_v56 }
 0x40b   :  { %v3442_v60 = vpop.f32.mrb[8].mxu0 }
 0x40c   :  { %v3464_v61 = vpop.f32.mrb[8].mxu1  ;;  %v3443_v63 = vpop.f32.mrb[9].mxu0 }
 0x40d   :  { %v3444_v0 = vadd.f32 %v3443_v63, %v3442_v60  ;;  %v3465_v1 = vpop.f32.mrb[9].mxu1  ;;  %v3445_v2 = vpop.f32.mrb[10].mxu0 }
 0x40e   :  { %v3466_v3 = vadd.f32 %v3465_v1, %v3464_v61  ;;  %v3467_v4 = vpop.f32.mrb[10].mxu1  ;;  %v3446_v5 = vpop.f32.mrb[11].mxu0 }
 0x40f   :  { %v2982_v6 = vadd.f32 %v3444_v0, %v3384_v62  ;;  %v3447_v7 = vadd.f32 %v3446_v5, %v3445_v2  ;;  %v3468_v8 = vpop.f32.mrb[11].mxu1 }
 0x410   :  { %v3469_v9 = vadd.f32 %v3468_v8, %v3467_v4 }
 0x411   :  { %v3023_v10 = vadd.f32 %v3466_v3, %v2982_v6  ;;  %v2985_v11 = vadd.f32 %v3447_v7, %v3384_v62 }
 0x413   :  { %v3026_v12 = vadd.f32 %v3469_v9, %v2985_v11 }
 0x415   :  { %v3424_v13 = vpack.c.bf16 %v3026_v12, %v3023_v10 }
 0x417   :  { %3425 = vst [vmem:[#allocation10] sm:$0xff] %v3424_v13  }
 0x418   :  { %4179 = shalt.err (!%p4176_p8)
}
 0x419   :  { %s4180_s14 = scalar_lea.hbm %s4373_s7, 128 }
 0x41a   :  { %p4181_p9 = scmp.ne.s32.totalorder %s4373_s7, %s4180_s14  ;;  %p4184_p10 = scmp.lt.u32.totalorder %s4180_s14, %s4373_s7 }
 0x41c   :  { %p4186_p11 = pnand %p4184_p10, %p4181_p9 }
 0x41e   :  { %4189 = shalt.err (!%p4186_p11)
}
 0x41f   :  { %3050 = dma.vmem_to_hbm [thread:$0]  %s3045_s9, 128, %s4373_s7, [#allocation4], %s4206_s3, %s4206_s3, %s4207_s11  }
 0x420   :  { %4196 = dma.done.wait [#allocation4], 128  }
 0x421   :  { %4197 = vsyncadd [#allocation4], 4294967168 }
 0x422   :  { %3054 = vsyncpa [#allocation3], 1 }
 0x423   :  { %3055 = vsyncpa [#allocation6], 1 }
 0x424   :  { %3056 = vsyncpa [#allocation9], 1 }
 0x425   :  { %3057 = vsyncpa [#allocation4], 1 }

</bundles_post_ra>
